<compile_context>
chip_gen: v6e
topology: v6e:2x2x1
jax: 0.10.0
libtpu: 0.0.40
codegen_flags: <defaults>
</compile_context>

<pallas_src>
import jax
import jax.numpy as jnp
from jax.experimental import pallas as pl
from jax.experimental.pallas import tpu as pltpu

D_IN = 784
D_H1 = 512
D_H2 = 256
D_OUT = 1
D_OUT_PAD = 128  # lane-pad the 1-wide final layer to one full vreg lane width


def discriminator_kernel(x_ref, w1_ref, b1_ref, w2_ref, b2_ref, w3_ref, b3_ref,
                         o_ref):
    # Linear(784, 512) + LeakyReLU(0.2)   (bf16 MXU inputs, f32 accumulate)
    h1 = jnp.dot(x_ref[...], w1_ref[...],
                 preferred_element_type=jnp.float32) + b1_ref[...]
    h1 = jnp.where(h1 > 0, h1, 0.2 * h1)
    # Linear(512, 256) + LeakyReLU(0.2)
    h2 = jnp.dot(h1.astype(jnp.bfloat16), w2_ref[...],
                 preferred_element_type=jnp.float32) + b2_ref[...]
    h2 = jnp.where(h2 > 0, h2, 0.2 * h2)
    # Linear(256, 1) (lane-padded to 128 cols) + Sigmoid
    h3 = jnp.dot(h2.astype(jnp.bfloat16), w3_ref[...],
                 preferred_element_type=jnp.float32) + b3_ref[...]
    o_ref[...] = (1.0 / (1.0 + jnp.exp(-h3))).astype(o_ref.dtype)


def _round_up(v, m):
    return ((v + m - 1) // m) * m


def discriminator_forward(x, params, *, tm=256):
    """x: (B, ...) with prod(...) == 784  ->  (B, 1) float32 probabilities."""
    w1, b1, w2, b2, w3, b3 = params
    B = x.shape[0]
    x2 = x.reshape(B, D_IN)  # PyTorch: x.view(x.size(0), 784)

    # bf16 MXU inputs; biases / accumulation / epilogue stay f32.
    x_bf = x2.astype(jnp.bfloat16)
    w1_bf = w1.astype(jnp.bfloat16)
    w2_bf = w2.astype(jnp.bfloat16)
    w3_bf = w3.astype(jnp.bfloat16)

    # Lane-pad the (256, 1) final layer to (256, 128); real logit = column 0.
    w3_pad = jnp.zeros((D_H2, D_OUT_PAD), jnp.bfloat16).at[:, :D_OUT].set(w3_bf)
    b3_pad = jnp.zeros((1, D_OUT_PAD), jnp.float32).at[:, :D_OUT].set(b3)

    # Batch tile: cap at 256 (fills 256-tall MXU on v6e/v7x, fine on v5e) and
    # shrink for small batches; resident weights are ~1.1 MiB in bf16 so the
    # footprint is tiny even against v7x's 64 MiB VMEM.
    tm = min(tm, _round_up(max(B, 1), 8))
    grid = (pl.cdiv(B, tm),)

    resident = lambda i: (0, 0)  # weights/biases held in VMEM across all steps

    flops = 2 * B * (D_IN * D_H1 + D_H1 * D_H2 + D_H2 * D_OUT_PAD)
    bytes_accessed = (x_bf.size * 2 + w1_bf.size * 2 + w2_bf.size * 2 +
                      w3_pad.size * 2 + b1.size * 4 + b2.size * 4 +
                      b3_pad.size * 4 + B * D_OUT_PAD * 4)

    out_pad = pl.pallas_call(
        discriminator_kernel,
        out_shape=jax.ShapeDtypeStruct((B, D_OUT_PAD), jnp.float32),
        grid=grid,
        in_specs=[
            pl.BlockSpec((tm, D_IN), lambda i: (i, 0)),       # x tile
            pl.BlockSpec((D_IN, D_H1), resident),             # w1
            pl.BlockSpec((1, D_H1), resident),                # b1
            pl.BlockSpec((D_H1, D_H2), resident),             # w2
            pl.BlockSpec((1, D_H2), resident),                # b2
            pl.BlockSpec((D_H2, D_OUT_PAD), resident),        # w3 (padded)
            pl.BlockSpec((1, D_OUT_PAD), resident),           # b3 (padded)
        ],
        out_specs=pl.BlockSpec((tm, D_OUT_PAD), lambda i: (i, 0)),
        compiler_params=pltpu.CompilerParams(
            dimension_semantics=("parallel",)),
        cost_estimate=pl.CostEstimate(
            flops=flops,
            transcendentals=B * D_OUT_PAD,
            bytes_accessed=bytes_accessed),
    )(x_bf, w1_bf, b1, w2_bf, b2, w3_pad, b3_pad)

    return out_pad[:, :D_OUT]


def init_params(key):
    """Deterministic init mimicking nn.Linear default (U(-1/sqrt(fan_in), +))."""
    dims = [(D_IN, D_H1), (D_H1, D_H2), (D_H2, D_OUT)]
    params = []
    for i, (fan_in, fan_out) in enumerate(dims):
        kw, kb = jax.random.split(jax.random.fold_in(key, i))
        bound = 1.0 / jnp.sqrt(float(fan_in))
        w = jax.random.uniform(kw, (fan_in, fan_out), jnp.float32,
                               minval=-bound, maxval=bound)
        # bias kept 2D (1, fan_out) for TPU-friendly broadcasting in-kernel
        b = jax.random.uniform(kb, (1, fan_out), jnp.float32,
                               minval=-bound, maxval=bound)
        params.extend([w, b])
    return tuple(params)


def reference_forward(x, params):
    """Pure f32 reference matching the PyTorch Discriminator forward."""
    w1, b1, w2, b2, w3, b3 = params
    x2 = x.reshape(x.shape[0], D_IN)
    h1 = x2 @ w1 + b1
    h1 = jnp.where(h1 > 0, h1, 0.2 * h1)
    h2 = h1 @ w2 + b2
    h2 = jnp.where(h2 > 0, h2, 0.2 * h2)
    return jax.nn.sigmoid(h2 @ w3 + b3)


if __name__ == "__main__":
    key = jax.random.PRNGKey(0)
    k_x, k_p = jax.random.split(key)

    B = 8
    # Discriminator input is an MNIST-like image batch (B, 1, 28, 28).
    x = jax.random.normal(k_x, (B, 1, 28, 28), jnp.float32)
    params = init_params(k_p)

    out = discriminator_forward(x, params)
    jax.block_until_ready(out)

    assert out.shape == (B, D_OUT), out.shape

    ref = reference_forward(x, params)
    # Tolerance relaxed vs the pure-f32 path because matmul inputs are bf16
    # (f32 accumulation); sigmoid output range is [0, 1].
    assert jnp.allclose(out, ref, atol=2e-2, rtol=2e-2), (
        float(jnp.max(jnp.abs(out - ref))))

    print("KERNEL_OK")
</pallas_src>

<mosaic_0001>
module attributes {stable_mosaic.version = 11 : i64} {
  func.func @discriminator_kernel(%arg0: i32, %arg1: memref<8x784xbf16, #tpu.memory_space<vmem>>, %arg2: memref<784x512xbf16, #tpu.memory_space<vmem>>, %arg3: memref<1x512xf32, #tpu.memory_space<vmem>>, %arg4: memref<512x256xbf16, #tpu.memory_space<vmem>>, %arg5: memref<1x256xf32, #tpu.memory_space<vmem>>, %arg6: memref<256x128xbf16, #tpu.memory_space<vmem>>, %arg7: memref<1x128xf32, #tpu.memory_space<vmem>>, %arg8: memref<8x128xf32, #tpu.memory_space<vmem>>) attributes {dimension_semantics = [#tpu.dimension_semantics<parallel>], iteration_bounds = array<i64: 1>, scalar_prefetch = 0 : i64, scratch_operands = 0 : i64, tpu.core_type = #tpu.core_type<tc>, window_params = [{transform_indices = @transform_0, window_bounds = array<i64: 8, 784>}, {pipeline_mode = #tpu.pipeline_mode<synchronous>, transform_indices = @transform_1, window_bounds = array<i64: 784, 512>}, {pipeline_mode = #tpu.pipeline_mode<synchronous>, transform_indices = @transform_2, window_bounds = array<i64: 1, 512>}, {pipeline_mode = #tpu.pipeline_mode<synchronous>, transform_indices = @transform_3, window_bounds = array<i64: 512, 256>}, {pipeline_mode = #tpu.pipeline_mode<synchronous>, transform_indices = @transform_4, window_bounds = array<i64: 1, 256>}, {pipeline_mode = #tpu.pipeline_mode<synchronous>, transform_indices = @transform_5, window_bounds = array<i64: 256, 128>}, {pipeline_mode = #tpu.pipeline_mode<synchronous>, transform_indices = @transform_6, window_bounds = array<i64: 1, 128>}, {transform_indices = @transform_7, window_bounds = array<i64: 8, 128>}]} {
    %c0 = arith.constant 0 : index
    %c0_0 = arith.constant 0 : index
    %0 = vector.load %arg1[%c0, %c0_0] : memref<8x784xbf16, #tpu.memory_space<vmem>>, vector<8x784xbf16>
    %c0_1 = arith.constant 0 : index
    %c0_2 = arith.constant 0 : index
    %1 = vector.load %arg2[%c0_1, %c0_2] : memref<784x512xbf16, #tpu.memory_space<vmem>>, vector<784x512xbf16>
    %cst = arith.constant dense<0.000000e+00> : vector<8x512xf32>
    %2 = tpu.matmul %0, %1, %cst {dimension_numbers = #tpu.dot_dimension_numbers<[1], [0], [0], [1], [0, 0, 1, 1], [], []>} : vector<8x784xbf16>, vector<784x512xbf16>, vector<8x512xf32> -> vector<8x512xf32>
    %c0_3 = arith.constant 0 : index
    %c0_4 = arith.constant 0 : index
    %3 = vector.load %arg3[%c0_3, %c0_4] : memref<1x512xf32, #tpu.memory_space<vmem>>, vector<1x512xf32>
    %4 = vector.broadcast %3 : vector<1x512xf32> to vector<8x512xf32>
    %5 = arith.addf %2, %4 : vector<8x512xf32>
    %cst_5 = arith.constant 0.000000e+00 : f32
    %6 = vector.broadcast %cst_5 : f32 to vector<8x512xf32>
    %7 = arith.cmpf ogt, %5, %6 : vector<8x512xf32>
    %cst_6 = arith.constant 2.000000e-01 : f32
    %8 = vector.broadcast %cst_6 : f32 to vector<8x512xf32>
    %9 = arith.mulf %8, %5 : vector<8x512xf32>
    %10 = arith.select %7, %5, %9 : vector<8x512xi1>, vector<8x512xf32>
    %11 = arith.truncf %10 : vector<8x512xf32> to vector<8x512xbf16>
    %c0_7 = arith.constant 0 : index
    %c0_8 = arith.constant 0 : index
    %12 = vector.load %arg4[%c0_7, %c0_8] : memref<512x256xbf16, #tpu.memory_space<vmem>>, vector<512x256xbf16>
    %cst_9 = arith.constant dense<0.000000e+00> : vector<8x256xf32>
    %13 = tpu.matmul %11, %12, %cst_9 {dimension_numbers = #tpu.dot_dimension_numbers<[1], [0], [0], [1], [0, 0, 1, 1], [], []>} : vector<8x512xbf16>, vector<512x256xbf16>, vector<8x256xf32> -> vector<8x256xf32>
    %c0_10 = arith.constant 0 : index
    %c0_11 = arith.constant 0 : index
    %14 = vector.load %arg5[%c0_10, %c0_11] : memref<1x256xf32, #tpu.memory_space<vmem>>, vector<1x256xf32>
    %15 = vector.broadcast %14 : vector<1x256xf32> to vector<8x256xf32>
    %16 = arith.addf %13, %15 : vector<8x256xf32>
    %cst_12 = arith.constant 0.000000e+00 : f32
    %17 = vector.broadcast %cst_12 : f32 to vector<8x256xf32>
    %18 = arith.cmpf ogt, %16, %17 : vector<8x256xf32>
    %cst_13 = arith.constant 2.000000e-01 : f32
    %19 = vector.broadcast %cst_13 : f32 to vector<8x256xf32>
    %20 = arith.mulf %19, %16 : vector<8x256xf32>
    %21 = arith.select %18, %16, %20 : vector<8x256xi1>, vector<8x256xf32>
    %22 = arith.truncf %21 : vector<8x256xf32> to vector<8x256xbf16>
    %c0_14 = arith.constant 0 : index
    %c0_15 = arith.constant 0 : index
    %23 = vector.load %arg6[%c0_14, %c0_15] : memref<256x128xbf16, #tpu.memory_space<vmem>>, vector<256x128xbf16>
    %cst_16 = arith.constant dense<0.000000e+00> : vector<8x128xf32>
    %24 = tpu.matmul %22, %23, %cst_16 {dimension_numbers = #tpu.dot_dimension_numbers<[1], [0], [0], [1], [0, 0, 1, 1], [], []>} : vector<8x256xbf16>, vector<256x128xbf16>, vector<8x128xf32> -> vector<8x128xf32>
    %c0_17 = arith.constant 0 : index
    %c0_18 = arith.constant 0 : index
    %25 = vector.load %arg7[%c0_17, %c0_18] : memref<1x128xf32, #tpu.memory_space<vmem>>, vector<1x128xf32>
    %26 = vector.broadcast %25 : vector<1x128xf32> to vector<8x128xf32>
    %27 = arith.addf %24, %26 : vector<8x128xf32>
    %cst_19 = arith.constant 0.000000e+00 : f32
    %28 = vector.broadcast %cst_19 : f32 to vector<8x128xf32>
    %29 = arith.subf %28, %27 : vector<8x128xf32>
    %30 = math.exp %29 : vector<8x128xf32>
    %cst_20 = arith.constant 1.000000e+00 : f32
    %31 = vector.broadcast %cst_20 : f32 to vector<8x128xf32>
    %32 = arith.addf %31, %30 : vector<8x128xf32>
    %cst_21 = arith.constant 1.000000e+00 : f32
    %33 = vector.broadcast %cst_21 : f32 to vector<8x128xf32>
    %34 = arith.divf %33, %32 : vector<8x128xf32>
    %c0_22 = arith.constant 0 : index
    %c0_23 = arith.constant 0 : index
    %35 = vector.load %arg8[%c0_22, %c0_23] : memref<8x128xf32, #tpu.memory_space<vmem>>, vector<8x128xf32>
    tpu.vector_store %arg8[%c0_22, %c0_23], %34 {strides = array<i32>} : memref<8x128xf32, #tpu.memory_space<vmem>>, vector<8x128xf32>,
    return
  }
  func.func @transform_0(%arg0: i32) -> (i32, i32) {
    %c0_i32 = arith.constant 0 : i32
    %c0_i32_0 = arith.constant 0 : i32
    return %arg0, %c0_i32 : i32, i32
  }
  func.func @transform_1(%arg0: i32) -> (i32, i32) {
    %c0_i32 = arith.constant 0 : i32
    %c0_i32_0 = arith.constant 0 : i32
    %c0_i32_1 = arith.constant 0 : i32
    return %c0_i32, %c0_i32_0 : i32, i32
  }
  func.func @transform_2(%arg0: i32) -> (i32, i32) {
    %c0_i32 = arith.constant 0 : i32
    %c0_i32_0 = arith.constant 0 : i32
    %c0_i32_1 = arith.constant 0 : i32
    return %c0_i32, %c0_i32_0 : i32, i32
  }
  func.func @transform_3(%arg0: i32) -> (i32, i32) {
    %c0_i32 = arith.constant 0 : i32
    %c0_i32_0 = arith.constant 0 : i32
    %c0_i32_1 = arith.constant 0 : i32
    return %c0_i32, %c0_i32_0 : i32, i32
  }
  func.func @transform_4(%arg0: i32) -> (i32, i32) {
    %c0_i32 = arith.constant 0 : i32
    %c0_i32_0 = arith.constant 0 : i32
    %c0_i32_1 = arith.constant 0 : i32
    return %c0_i32, %c0_i32_0 : i32, i32
  }
  func.func @transform_5(%arg0: i32) -> (i32, i32) {
    %c0_i32 = arith.constant 0 : i32
    %c0_i32_0 = arith.constant 0 : i32
    %c0_i32_1 = arith.constant 0 : i32
    return %c0_i32, %c0_i32_0 : i32, i32
  }
  func.func @transform_6(%arg0: i32) -> (i32, i32) {
    %c0_i32 = arith.constant 0 : i32
    %c0_i32_0 = arith.constant 0 : i32
    %c0_i32_1 = arith.constant 0 : i32
    return %c0_i32, %c0_i32_0 : i32, i32
  }
  func.func @transform_7(%arg0: i32) -> (i32, i32) {
    %c0_i32 = arith.constant 0 : i32
    %c0_i32_0 = arith.constant 0 : i32
    return %arg0, %c0_i32 : i32, i32
  }
}

</mosaic_0001>

<bundles_post_ra>
// kernel: tpu_custom_call.1
= control target key start
LH: loop header
LB: loop body
LE: loop exit
PB: predicated region body
PF: predicated region fallthrough
CT: control target
= control target key end

     0   :  { %12 = vsyncpa [#allocation3], 0  ;;  %s3346_s0 = inlined_call_operand.hbm [shape: bf16[8,784], index: 0, kind: input, shape index: {}]   ;;  %s3347_s1 = inlined_call_operand.hbm [shape: bf16[784,512], index: 1, kind: input, shape index: {}]   ;;  %s3348_s2 = inlined_call_operand.hbm [shape: f32[1,512], index: 2, kind: input, shape index: {}]   ;;  %s3349_s3 = inlined_call_operand.hbm [shape: bf16[512,256], index: 3, kind: input, shape index: {}]   ;;  %s3350_s4 = inlined_call_operand.vmem [shape: f32[1,256], index: 4, kind: input, shape index: {}]   ;;  %s3351_s5 = inlined_call_operand.hbm [shape: bf16[256,128], index: 5, kind: input, shape index: {}]   ;;  %s3352_s6 = inlined_call_operand.vmem [shape: f32[1,128], index: 6, kind: input, shape index: {}]   ;;  %s3353_s7 = inlined_call_operand.hbm [shape: f32[8,128], index: 7, kind: output, shape index: {}]  }
   0x1   :  { %13 = vsyncpa [#allocation6], 0 }
   0x2   :  { %14 = vsyncpa [#allocation9], 0 }
   0x3   :  { %15 = vsyncpa [#allocation4], 0  ;;  %s3217_s24 = smov [#allocation5]  }
   0x4   :  { %s31_s25 = sshll.u32 %s3217_s24, 4  ;;  %s32_s25 = int_to_ptr.vmem [resolvable:$true] %s31_s25 }
   0x5   :  { %s3097_s26 = scalar_lea.vmem %s32_s25, 25088  ;;  %p3102_p1 = scmp.lt.s32.totalorder %s32_s25, %s32_s25 }
   0x6   :  { %p3098_p0 = scmp.ne.s32.totalorder %s32_s25, %s3097_s26  ;;  %p3103_p2 = scmp.lt.s32.totalorder %s3097_s26, %s3097_s26 }
   0x8   :  { %p3104_p3 = por %p3103_p2, %p3102_p1 }
   0xa   :  { %p3105_p4 = pnand %p3104_p3, %p3098_p0 }
   0xc   :  { %3108 = shalt.err (!%p3105_p4)
}
   0xd   :  { %s3218_s27 = smov 256   ;;  %s3219_s28 = smov 16  }
   0xe   :  { %37 = dma.hbm_to_vmem [thread:$0]  %s3347_s1, 25088, %s32_s25, [#allocation6], %s3218_s27, %s3218_s27, %s3219_s28  }
   0xf   :  { %s3220_s8 = smov [#allocation8]  }
  0x10   :  { %s53_s9 = sshll.u32 %s3220_s8, 4  ;;  %s54_s9 = int_to_ptr.vmem [resolvable:$true] %s53_s9 }
  0x11   :  { %s3117_s10 = scalar_lea.vmem %s54_s9, 8192  ;;  %p3122_p6 = scmp.lt.s32.totalorder %s54_s9, %s54_s9 }
  0x12   :  { %p3118_p5 = scmp.ne.s32.totalorder %s54_s9, %s3117_s10  ;;  %p3123_p7 = scmp.lt.s32.totalorder %s3117_s10, %s3117_s10 }
  0x14   :  { %p3124_p8 = por %p3123_p7, %p3122_p6 }
  0x16   :  { %p3125_p9 = pnand %p3124_p8, %p3118_p5 }
  0x18   :  { %3128 = shalt.err (!%p3125_p9)
}
  0x19   :  { %s3221_s11 = smov 128   ;;  %s3222_s12 = smov 8  }
  0x1a   :  { %59 = dma.hbm_to_vmem [thread:$0]  %s3349_s3, 8192, %s54_s9, [#allocation9], %s3221_s11, %s3221_s11, %s3222_s12  }
  0x1b   :  { %s3223_s15 = smov [#allocation2]   ;;  %s3224_s17 = smov [#allocation7]  }
  0x1c   :  { %s22_s16 = sshll.u32 %s3223_s15, 4  ;;  %s44_s1 = sshll.u32 %s3224_s17, 4  ;;  %s23_s16 = int_to_ptr.vmem [resolvable:$true] %s22_s16  ;;  %s45_s1 = int_to_ptr.vmem [resolvable:$true] %s44_s1 }
  0x1d   :  { %s3137_s18 = scalar_lea.vmem %s23_s16, 448  ;;  %p3142_p11 = scmp.lt.s32.totalorder %s23_s16, %s23_s16 }
  0x1e   :  { %p3138_p10 = scmp.ne.s32.totalorder %s23_s16, %s3137_s18  ;;  %p3143_p12 = scmp.lt.s32.totalorder %s3137_s18, %s3137_s18 }
  0x20   :  { %p3144_p13 = por %p3143_p12, %p3142_p11 }
  0x22   :  { %p3145_p0 = pnand %p3144_p13, %p3138_p10 }
  0x24   :  { %3148 = shalt.err (!%p3145_p0)
}
  0x25   :  { %25 = dma.hbm_to_vmem [thread:$0]  %s3346_s0, 448, %s23_s16, [#allocation3]  }
  0x26   :  { %s3157_s21 = scalar_lea.vmem %s45_s1, 64  ;;  %p3162_p2 = scmp.lt.s32.totalorder %s45_s1, %s45_s1 }
  0x27   :  { %p3158_p1 = scmp.ne.s32.totalorder %s45_s1, %s3157_s21  ;;  %p3163_p3 = scmp.lt.s32.totalorder %s3157_s21, %s3157_s21 }
  0x29   :  { %p3164_p4 = por %p3163_p3, %p3162_p2 }
  0x2b   :  { %p3165_p5 = pnand %p3164_p4, %p3158_p1 }
  0x2d   :  { %3168 = shalt.err (!%p3165_p5)
}
  0x2e   :  { %47 = dma.hbm_to_vmem [thread:$0]  %s3348_s2, 64, %s45_s1, [#allocation6]  }
  0x2f   :  { %s3225_s23 = smov [#allocation10]  }
  0x30   :  { %s67_s24 = sshll.u32 %s3225_s23, 4  ;;  %s68_s24 = int_to_ptr.vmem [resolvable:$true] %s67_s24 }
  0x31   :  { %s3177_s25 = scalar_lea.vmem %s68_s24, 2048  ;;  %p3182_p7 = scmp.lt.s32.totalorder %s68_s24, %s68_s24 }
  0x32   :  { %p3178_p6 = scmp.ne.s32.totalorder %s68_s24, %s3177_s25  ;;  %p3183_p8 = scmp.lt.s32.totalorder %s3177_s25, %s3177_s25 }
  0x34   :  { %p3184_p9 = por %p3183_p8, %p3182_p7 }
  0x36   :  { %p3185_p10 = pnand %p3184_p9, %p3178_p6 }
  0x38   :  { %3188 = shalt.err (!%p3185_p10)
}
  0x39   :  { %s3226_s0 = smov 64   ;;  %s3227_s26 = smov 4  }
  0x3a   :  { %73 = dma.hbm_to_vmem [thread:$0]  %s3351_s5, 2048, %s68_s24, [#allocation9], %s3226_s0, %s3226_s0, %s3227_s26  }
  0x3b   :  { %3209 = dma.done.wait [#allocation3], 448  }
  0x3c   :  { %3210 = vsyncadd [#allocation3], 4294966848 }
  0x3d   :  { %3211 = dma.done.wait [#allocation6], 25152  }
  0x3e   :  { %3212 = vsyncadd [#allocation6], 4294942144 }
  0x3f   :  { %3213 = dma.done.wait [#allocation9], 10240  }
  0x40   :  { %3214 = vsyncadd [#allocation9], 4294957056  ;;  %v2672_v0 = vld [vmem:[#allocation5 + $0xe4] ss:$16 sps:$4 sm:$0xff]   ;;  %v2676_v2 = vld [vmem:[#allocation5 + $0xe0] ss:$16 sps:$4 sm:$0xff]  }
  0x41   :  { %v2674_v1 = vld [vmem:[#allocation5 + $0x2e4] ss:$16 sps:$4 sm:$0xff]   ;;  %1322 = vmatprep.subr.bf16.mxu0 %v2672_v0  ;;  %v2677_v3 = vld [vmem:[#allocation5 + $0x2e0] ss:$16 sps:$4 sm:$0xff]   ;;  %vm1318_vm0 = vcmask 130048   ;;  %s3229_s30 = smov [#allocation11]  }
  0x42   :  { %1363 = vmatprep.subr.bf16.mxu1 %v2674_v1  ;;  %v2678_v4 = vld [vmem:[#allocation5 + $0xc4] ss:$16 sps:$4 sm:$0xff]   ;;  %1323 = vmatpush1.bf16.msra.mxu0 %v2676_v2  ;;  %v2682_v6 = vld [vmem:[#allocation5 + $0xc0] ss:$16 sps:$4 sm:$0xff]   ;;  %s2340_s8 = sshll.u32 %s3229_s30, 4  ;;  %s2341_s8 = int_to_ptr.vmem [resolvable:$true] %s2340_s8 }
  0x43   :  { %1364 = vmatpush1.bf16.msra.mxu1 %v2677_v3  ;;  %v2680_v5 = vld [vmem:[#allocation5 + $0x2c4] ss:$16 sps:$4 sm:$0xff]   ;;  %1324 = vmatprep.subr.bf16.mxu0 %v2678_v4  ;;  %v2683_v7 = vld [vmem:[#allocation5 + $0x2c0] ss:$16 sps:$4 sm:$0xff]   ;;  %s3189_s9 = scalar_lea.vmem %s2341_s8, 128  ;;  %p3194_p12 = scmp.lt.s32.totalorder %s2341_s8, %s2341_s8 }
  0x44   :  { %1365 = vmatprep.subr.bf16.mxu1 %v2680_v5  ;;  %v2684_v8 = vld [vmem:[#allocation5 + $0xa4] ss:$16 sps:$4 sm:$0xff]   ;;  %v2688_v10 = vld [vmem:[#allocation5 + $0xa0] ss:$16 sps:$4 sm:$0xff]   ;;  %p3190_p11 = scmp.ne.s32.totalorder %s2341_s8, %s3189_s9  ;;  %p3195_p13 = scmp.lt.s32.totalorder %s3189_s9, %s3189_s9 }
  0x45   :  { %v2686_v9 = vld [vmem:[#allocation5 + $0x2a4] ss:$16 sps:$4 sm:$0xff]   ;;  %v2689_v11 = vld [vmem:[#allocation5 + $0x2a0] ss:$16 sps:$4 sm:$0xff]  }
  0x46   :  { %1325 = vmatpush1.bf16.msra.mxu0 %v2682_v6  ;;  %v2690_v12 = vld [vmem:[#allocation5 + $0x84] ss:$16 sps:$4 sm:$0xff]   ;;  %v2694_v14 = vld [vmem:[#allocation5 + $0x80] ss:$16 sps:$4 sm:$0xff]   ;;  %p3196_p0 = por %p3195_p13, %p3194_p12 }
  0x47   :  { %1366 = vmatpush1.bf16.msra.mxu1 %v2683_v7  ;;  %1326 = vmatprep.subr.bf16.mxu0 %v2684_v8  ;;  %v2692_v13 = vld [vmem:[#allocation5 + $0x284] ss:$16 sps:$4 sm:$0xff]   ;;  %v2695_v15 = vld [vmem:[#allocation5 + $0x280] ss:$16 sps:$4 sm:$0xff]  }
  0x48   :  { %1367 = vmatprep.subr.bf16.mxu1 %v2686_v9  ;;  %v2696_v16 = vld [vmem:[#allocation5 + $0x64] ss:$16 sps:$4 sm:$0xff]   ;;  %v2700_v18 = vld [vmem:[#allocation5 + $0x60] ss:$16 sps:$4 sm:$0xff]   ;;  %p3197_p1 = pnand %p3196_p0, %p3190_p11 }
  0x49   :  { %v2698_v17 = vld [vmem:[#allocation5 + $0x264] ss:$16 sps:$4 sm:$0xff]   ;;  %v2701_v19 = vld [vmem:[#allocation5 + $0x260] ss:$16 sps:$4 sm:$0xff]  }
  0x4a   :  { %1327 = vmatpush1.bf16.msra.mxu0 %v2688_v10  ;;  %v2702_v20 = vld [vmem:[#allocation5 + $0x44] ss:$16 sps:$4 sm:$0xff]   ;;  %v2706_v22 = vld [vmem:[#allocation5 + $0x40] ss:$16 sps:$4 sm:$0xff]  }
  0x4b   :  { %1368 = vmatpush1.bf16.msra.mxu1 %v2689_v11  ;;  %1328 = vmatprep.subr.bf16.mxu0 %v2690_v12  ;;  %v2704_v21 = vld [vmem:[#allocation5 + $0x244] ss:$16 sps:$4 sm:$0xff]   ;;  %v2707_v23 = vld [vmem:[#allocation5 + $0x240] ss:$16 sps:$4 sm:$0xff]   ;;  %v2783_v11 = vld [vmem:[#allocation5 + $0xec] ss:$16 sps:$4 sm:$0xff]  }
  0x4c   :  { %1369 = vmatprep.subr.bf16.mxu1 %v2692_v13  ;;  %v2708_v24 = vld [vmem:[#allocation5 + $0x24] ss:$16 sps:$4 sm:$0xff]   ;;  %v2712_v26 = vld [vmem:[#allocation5 + $0x20] ss:$16 sps:$4 sm:$0xff]   ;;  %v3228_v13 = vmov 0  }
  0x4d   :  { %v2710_v25 = vld [vmem:[#allocation5 + $0x224] ss:$16 sps:$4 sm:$0xff]   ;;  %v2713_v27 = vld [vmem:[#allocation5 + $0x220] ss:$16 sps:$4 sm:$0xff]  }
  0x4e   :  { %1329 = vmatpush1.bf16.msra.mxu0 %v2694_v14  ;;  %v2714_v28 = vld [vmem:[#allocation5 + $0x4] ss:$16 sps:$4 sm:$0xff]   ;;  %v2718_v30 = vld [vmem:[#allocation5] ss:$16 sps:$4 sm:$0xff]  }
  0x4f   :  { %1370 = vmatpush1.bf16.msra.mxu1 %v2695_v15  ;;  %1330 = vmatprep.subr.bf16.mxu0 %v2696_v16  ;;  %v2716_v29 = vld [vmem:[#allocation5 + $0x204] ss:$16 sps:$4 sm:$0xff]   ;;  %v2719_v31 = vld [vmem:[#allocation5 + $0x200] ss:$16 sps:$4 sm:$0xff]   ;;  %v2781_v15 = vld [vmem:[#allocation5 + $0xe8] ss:$16 sps:$4 sm:$0xff]  }
  0x50   :  { %1371 = vmatprep.subr.bf16.mxu1 %v2698_v17  ;;  %v2720_v32 = vld [vmem:[#allocation5 + $0x1e4] ss:$16 sps:$4 sm:$0xff]   ;;  %v2724_v34 = vld [vmem:[#allocation5 + $0x1e0] ss:$16 sps:$4 sm:$0xff]   ;;  %v3298_v17 = vld [vmem:[#allocation2 + $0x18] ss:$0 sps:$4 sm:$0xff]  }
  0x51   :  { %v2722_v33 = vld [vmem:[#allocation5 + $0x3e4] ss:$16 sps:$4 sm:$0xff]   ;;  %v2725_v35 = vld [vmem:[#allocation5 + $0x3e0] ss:$16 sps:$4 sm:$0xff]  }
  0x52   :  { %1331 = vmatpush1.bf16.msra.mxu0 %v2700_v18  ;;  %v2726_v36 = vld [vmem:[#allocation5 + $0x1c4] ss:$16 sps:$4 sm:$0xff]   ;;  %v2730_v38 = vld [vmem:[#allocation5 + $0x1c0] ss:$16 sps:$4 sm:$0xff]   ;;  %v2790_v18 = vld [vmem:[#allocation5 + $0xcc] ss:$16 sps:$4 sm:$0xff]  }
  0x53   :  { %1372 = vmatpush1.bf16.msra.mxu1 %v2701_v19  ;;  %1332 = vmatprep.subr.bf16.mxu0 %v2702_v20  ;;  %v2728_v37 = vld [vmem:[#allocation5 + $0x3c4] ss:$16 sps:$4 sm:$0xff]   ;;  %v2731_v39 = vld [vmem:[#allocation5 + $0x3c0] ss:$16 sps:$4 sm:$0xff]   ;;  %v2788_v20 = vld [vmem:[#allocation5 + $0xc8] ss:$16 sps:$4 sm:$0xff]  }
  0x54   :  { %1373 = vmatprep.subr.bf16.mxu1 %v2704_v21  ;;  %v2732_v40 = vld [vmem:[#allocation5 + $0x1a4] ss:$16 sps:$4 sm:$0xff]   ;;  %v2736_v42 = vld [vmem:[#allocation5 + $0x1a0] ss:$16 sps:$4 sm:$0xff]  }
  0x55   :  { %v2734_v41 = vld [vmem:[#allocation5 + $0x3a4] ss:$16 sps:$4 sm:$0xff]   ;;  %v2737_v43 = vld [vmem:[#allocation5 + $0x3a0] ss:$16 sps:$4 sm:$0xff]  }
  0x56   :  { %1333 = vmatpush1.bf16.msra.mxu0 %v2706_v22  ;;  %v2738_v44 = vld [vmem:[#allocation5 + $0x184] ss:$16 sps:$4 sm:$0xff]   ;;  %v93_v48 = vld [vmem:[#allocation2 + $0x8] sm:$0xff] }
  0x57   :  { %1374 = vmatpush1.bf16.msra.mxu1 %v2707_v23  ;;  %1334 = vmatprep.subr.bf16.mxu0 %v2708_v24  ;;  %v2740_v45 = vld [vmem:[#allocation5 + $0x384] ss:$16 sps:$4 sm:$0xff]   ;;  %v2742_v49 = vld [vmem:[#allocation5 + $0x180] ss:$16 sps:$4 sm:$0xff]   ;;  %v3287_v51 = vcombine.high %v93_v48, %v93_v48  ;;  %v3293_v7 = vcombine.low %v93_v48, %v93_v48  ;;  %v2796_v22 = vld [vmem:[#allocation5 + $0xac] ss:$16 sps:$4 sm:$0xff]  }
  0x58   :  { %1375 = vmatprep.subr.bf16.mxu1 %v2710_v25  ;;  %v92_v46 = vld [vmem:[#allocation2] sm:$0xff]  ;;  %v2743_v50 = vld [vmem:[#allocation5 + $0x380] ss:$16 sps:$4 sm:$0xff]   ;;  %v2832_v48 = vld [vmem:[#allocation5 + $0x1ec] ss:$16 sps:$4 sm:$0xff]  }
  0x59   :  { %v3285_v47 = vcombine.high %v92_v46, %v92_v46  ;;  %v2744_v52 = vld [vmem:[#allocation5 + $0x164] ss:$16 sps:$4 sm:$0xff]   ;;  %1395 = vmatprep.mubr.bf16.mxu1 %v3287_v51  ;;  %v2748_v54 = vld [vmem:[#allocation5 + $0x160] ss:$16 sps:$4 sm:$0xff]   ;;  %v3291_v6 = vcombine.low %v92_v46, %v92_v46  ;;  %v2794_v24 = vld [vmem:[#allocation5 + $0xa8] ss:$16 sps:$4 sm:$0xff]  }
  0x5a   :  { %1335 = vmatpush1.bf16.msra.mxu0 %v2712_v26  ;;  %v2746_v53 = vld [vmem:[#allocation5 + $0x364] ss:$16 sps:$4 sm:$0xff]   ;;  %v2749_v55 = vld [vmem:[#allocation5 + $0x360] ss:$16 sps:$4 sm:$0xff]   ;;  %v2802_v26 = vld [vmem:[#allocation5 + $0x8c] ss:$16 sps:$4 sm:$0xff]  }
  0x5b   :  { %1376 = vmatpush1.bf16.msra.mxu1 %v2713_v27  ;;  %1336 = vmatprep.subr.bf16.mxu0 %v2714_v28  ;;  %v2750_v56 = vld [vmem:[#allocation5 + $0x144] ss:$16 sps:$4 sm:$0xff]   ;;  %v2754_v58 = vld [vmem:[#allocation5 + $0x140] ss:$16 sps:$4 sm:$0xff]   ;;  %v2800_v28 = vld [vmem:[#allocation5 + $0x88] ss:$16 sps:$4 sm:$0xff]  }
  0x5c   :  { %1377 = vmatprep.subr.bf16.mxu1 %v2716_v29  ;;  %1354 = vmatprep.mubr.bf16.mxu0 %v3285_v47  ;;  %v2752_v57 = vld [vmem:[#allocation5 + $0x344] ss:$16 sps:$4 sm:$0xff]   ;;  %v2755_v59 = vld [vmem:[#allocation5 + $0x340] ss:$16 sps:$4 sm:$0xff]   ;;  %v2824_v46 = vld [vmem:[#allocation5 + $0x8] ss:$16 sps:$4 sm:$0xff]  }
  0x5d   :  { %v2756_v60 = vld [vmem:[#allocation5 + $0x124] ss:$16 sps:$4 sm:$0xff]   ;;  %v2760_v62 = vld [vmem:[#allocation5 + $0x120] ss:$16 sps:$4 sm:$0xff]  }
  0x5e   :  { %1337 = vmatpush1.bf16.msra.mxu0 %v2718_v30  ;;  %v2758_v61 = vld [vmem:[#allocation5 + $0x324] ss:$16 sps:$4 sm:$0xff]   ;;  %v2761_v63 = vld [vmem:[#allocation5 + $0x320] ss:$16 sps:$4 sm:$0xff]   ;;  %v2808_v30 = vld [vmem:[#allocation5 + $0x6c] ss:$16 sps:$4 sm:$0xff]  }
  0x5f   :  { %1378 = vmatpush1.bf16.msra.mxu1 %v2719_v31  ;;  %1338 = vmatprep.subr.bf16.mxu0 %v2720_v32  ;;  %v2762_v0 = vld [vmem:[#allocation5 + $0x104] ss:$16 sps:$4 sm:$0xff]   ;;  %v2766_v2 = vld [vmem:[#allocation5 + $0x100] ss:$16 sps:$4 sm:$0xff]  }
  0x60   :  { %1379 = vmatprep.subr.bf16.mxu1 %v2722_v33  ;;  %v2764_v1 = vld [vmem:[#allocation5 + $0x304] ss:$16 sps:$4 sm:$0xff]   ;;  %v2767_v3 = vld [vmem:[#allocation5 + $0x300] ss:$16 sps:$4 sm:$0xff]  }
  0x61   :  { %v2774_v4 = vld [vmem:[#allocation5 + $0x4e4] ss:$16 sps:$4 sm:$0xff]   ;;  %v2772_v8 = vld [vmem:[#allocation5 + $0x4e0] ss:$16 sps:$4 sm:$0xff]  }
  0x62   :  { %1339 = vmatpush2.bf16.msra.mxu0 %v2724_v34  ;;  %v2777_v5 = vld [vmem:[#allocation5 + $0x604] ss:$16 sps:$4 sm:$0xff]   ;;  %v2775_v9 = vld [vmem:[#allocation5 + $0x600] ss:$16 sps:$4 sm:$0xff]   ;;  %v2806_v34 = vld [vmem:[#allocation5 + $0x68] ss:$16 sps:$4 sm:$0xff]  }
  0x63   :  { %1380 = vmatpush2.bf16.msra.mxu1 %v2725_v35  ;;  %1340 = vmatprep.subr.bf16.mxu0 %v2726_v36  ;;  %v2780_v10 = vld [vmem:[#allocation5 + $0x4c4] ss:$16 sps:$4 sm:$0xff]   ;;  %v2778_v12 = vld [vmem:[#allocation5 + $0x4c0] ss:$16 sps:$4 sm:$0xff]   ;;  %v2814_v36 = vld [vmem:[#allocation5 + $0x4c] ss:$16 sps:$4 sm:$0xff]  }
  0x64   :  { %1381 = vmatprep.subr.bf16.mxu1 %v2728_v37  ;;  %v2786_v14 = vld [vmem:[#allocation5 + $0x4a4] ss:$16 sps:$4 sm:$0xff]   ;;  %v2784_v16 = vld [vmem:[#allocation5 + $0x4a0] ss:$16 sps:$4 sm:$0xff]  }
  0x65   :  { %v2793_v19 = vld [vmem:[#allocation5 + $0x484] ss:$16 sps:$4 sm:$0xff]   ;;  %v2791_v21 = vld [vmem:[#allocation5 + $0x480] ss:$16 sps:$4 sm:$0xff]  }
  0x66   :  { %1341 = vmatpush2.bf16.msra.mxu0 %v2730_v38  ;;  %v2799_v23 = vld [vmem:[#allocation5 + $0x464] ss:$16 sps:$4 sm:$0xff]   ;;  %v2797_v25 = vld [vmem:[#allocation5 + $0x460] ss:$16 sps:$4 sm:$0xff]   ;;  %v2812_v38 = vld [vmem:[#allocation5 + $0x48] ss:$16 sps:$4 sm:$0xff]  }
  0x67   :  { %1382 = vmatpush2.bf16.msra.mxu1 %v2731_v39  ;;  %1342 = vmatprep.subr.bf16.mxu0 %v2732_v40  ;;  %v2805_v27 = vld [vmem:[#allocation5 + $0x444] ss:$16 sps:$4 sm:$0xff]   ;;  %v2803_v29 = vld [vmem:[#allocation5 + $0x440] ss:$16 sps:$4 sm:$0xff]   ;;  %v2820_v40 = vld [vmem:[#allocation5 + $0x2c] ss:$16 sps:$4 sm:$0xff]  }
  0x68   :  { %1383 = vmatprep.subr.bf16.mxu1 %v2734_v41  ;;  %v2811_v31 = vld [vmem:[#allocation5 + $0x424] ss:$16 sps:$4 sm:$0xff]   ;;  %v2809_v35 = vld [vmem:[#allocation5 + $0x420] ss:$16 sps:$4 sm:$0xff]  }
  0x69   :  { %v3303_v32 = vld [vmem:[#allocation2 + $0x10] sm:$0xff]  ;;  %v2815_v39 = vld [vmem:[#allocation5 + $0x400] ss:$16 sps:$4 sm:$0xff]  }
  0x6a   :  { %1343 = vmatpush2.bf16.msra.mxu0 %v2736_v42  ;;  %v3307_v33 = vcombine.high %v3303_v32, %v3303_v32  ;;  %v2817_v37 = vld [vmem:[#allocation5 + $0x404] ss:$16 sps:$4 sm:$0xff]   ;;  %v2818_v42 = vld [vmem:[#allocation5 + $0x28] ss:$16 sps:$4 sm:$0xff]  }
  0x6b   :  { %1384 = vmatpush2.bf16.msra.mxu1 %v2737_v43  ;;  %1344 = vmatprep.subr.bf16.mxu0 %v2738_v44  ;;  %v2823_v41 = vld [vmem:[#allocation5 + $0x5e4] ss:$16 sps:$4 sm:$0xff]   ;;  %v2821_v43 = vld [vmem:[#allocation5 + $0x5e0] ss:$16 sps:$4 sm:$0xff]   ;;  %v2826_v44 = vld [vmem:[#allocation5 + $0xc] ss:$16 sps:$4 sm:$0xff]  }
  0x6c   :  { %1385 = vmatprep.subr.bf16.mxu1 %v2740_v45  ;;  %v2829_v45 = vld [vmem:[#allocation5 + $0x5c4] ss:$16 sps:$4 sm:$0xff]  }
  0x6e   :  { %1345 = vmatpush2.bf16.msra.mxu0 %v2742_v49  ;;  %v2835_v49 = vld [vmem:[#allocation5 + $0x5a4] ss:$16 sps:$4 sm:$0xff]  }
  0x6f   :  { %1386 = vmatpush2.bf16.msra.mxu1 %v2743_v50  ;;  %1346 = vmatprep.subr.bf16.mxu0 %v2744_v52  ;;  %v2830_v50 = vld [vmem:[#allocation5 + $0x1e8] ss:$16 sps:$4 sm:$0xff]   ;;  %v2833_v52 = vld [vmem:[#allocation5 + $0x5a0] ss:$16 sps:$4 sm:$0xff]  }
  0x70   :  { %1387 = vmatprep.subr.bf16.mxu1 %v2746_v53  ;;  %v2838_v53 = vld [vmem:[#allocation5 + $0x1cc] ss:$16 sps:$4 sm:$0xff]  }
  0x72   :  { %1347 = vmatpush2.bf16.msra.mxu0 %v2748_v54  ;;  %v2841_v54 = vld [vmem:[#allocation5 + $0x584] ss:$16 sps:$4 sm:$0xff]  }
  0x73   :  { %1388 = vmatpush2.bf16.msra.mxu1 %v2749_v55  ;;  %1348 = vmatprep.subr.bf16.mxu0 %v2750_v56  ;;  %v2836_v55 = vld [vmem:[#allocation5 + $0x1c8] ss:$16 sps:$4 sm:$0xff]   ;;  %v2839_v56 = vld [vmem:[#allocation5 + $0x580] ss:$16 sps:$4 sm:$0xff]  }
  0x74   :  { %1389 = vmatprep.subr.bf16.mxu1 %v2752_v57  ;;  %v2844_v57 = vld [vmem:[#allocation5 + $0x1ac] ss:$16 sps:$4 sm:$0xff]  }
  0x76   :  { %1349 = vmatpush2.bf16.msra.mxu0 %v2754_v58  ;;  %v2847_v58 = vld [vmem:[#allocation5 + $0x564] ss:$16 sps:$4 sm:$0xff]  }
  0x77   :  { %1390 = vmatpush2.bf16.msra.mxu1 %v2755_v59  ;;  %1350 = vmatprep.subr.bf16.mxu0 %v2756_v60  ;;  %v2842_v59 = vld [vmem:[#allocation5 + $0x1a8] ss:$16 sps:$4 sm:$0xff]   ;;  %v2845_v60 = vld [vmem:[#allocation5 + $0x560] ss:$16 sps:$4 sm:$0xff]  }
  0x78   :  { %1391 = vmatprep.subr.bf16.mxu1 %v2758_v61  ;;  %v2850_v61 = vld [vmem:[#allocation5 + $0x18c] ss:$16 sps:$4 sm:$0xff]  }
  0x7a   :  { %1351 = vmatpush2.bf16.msra.mxu0 %v2760_v62  ;;  %v2853_v62 = vld [vmem:[#allocation5 + $0x544] ss:$16 sps:$4 sm:$0xff]  }
  0x7b   :  { %1392 = vmatpush2.bf16.msra.mxu1 %v2761_v63  ;;  %1352 = vmatprep.subr.bf16.mxu0 %v2762_v0  ;;  %v2848_v63 = vld [vmem:[#allocation5 + $0x188] ss:$16 sps:$4 sm:$0xff]   ;;  %v2851_v0 = vld [vmem:[#allocation5 + $0x540] ss:$16 sps:$4 sm:$0xff]  }
  0x7c   :  { %1393 = vmatprep.subr.bf16.mxu1 %v2764_v1  ;;  %v2856_v1 = vld [vmem:[#allocation5 + $0x16c] ss:$16 sps:$4 sm:$0xff]  }
  0x7e   :  { %1353 = vmatpush2.bf16.msra.mxu0 %v2766_v2  ;;  %v2859_v2 = vld [vmem:[#allocation5 + $0x524] ss:$16 sps:$4 sm:$0xff]  }
  0x7f   :  { %1394 = vmatpush2.bf16.msra.mxu1 %v2767_v3  ;;  %1404 = vmatprep.subr.bf16.mxu0 %v2774_v4  ;;  %v2854_v3 = vld [vmem:[#allocation5 + $0x168] ss:$16 sps:$4 sm:$0xff]   ;;  %v2857_v4 = vld [vmem:[#allocation5 + $0x520] ss:$16 sps:$4 sm:$0xff]  }
  0x80   :  { %1459 = vmatprep.subr.bf16.mxu1 %v2777_v5  ;;  %v2862_v5 = vld [vmem:[#allocation5 + $0x14c] ss:$16 sps:$4 sm:$0xff]  }
  0x81   :  { %1355 = vmatmul.mubr.bf16.vlgmr.msra.gmra.mxu0 %v3291_v6 }
  0x82   :  { %1396 = vmatmul.mubr.bf16.vlgmr.msra.gmra.mxu1 %v3293_v7  ;;  %1405 = vmatpush1.bf16.msra.mxu0 %v2772_v8  ;;  %v2865_v8 = vld [vmem:[#allocation5 + $0x504] ss:$16 sps:$4 sm:$0xff]  }
  0x83   :  { %1460 = vmatpush1.bf16.msra.mxu1 %v2775_v9  ;;  %1406 = vmatprep.subr.bf16.mxu0 %v2780_v10  ;;  %v2860_v9 = vld [vmem:[#allocation5 + $0x148] ss:$16 sps:$4 sm:$0xff]   ;;  %v2863_v10 = vld [vmem:[#allocation5 + $0x500] ss:$16 sps:$4 sm:$0xff]  }
  0x84   :  { %1477 = vmatprep.mubr.bf16.mxu1 %v3228_v13  ;;  %1486 = vmatprep.subr.bf16.mxu1 %v2783_v11  ;;  %v2870_v11 = vld [vmem:[#allocation5 + $0x12c] ss:$16 sps:$4 sm:$0xff]  }
  0x85   :  { %1436 = vmatprep.mubr.bf16.mxu0 %v3307_v33 }
  0x86   :  { %1407 = vmatpush1.bf16.msra.mxu0 %v2778_v12  ;;  %v2873_v12 = vld [vmem:[#allocation5 + $0x2ec] ss:$16 sps:$4 sm:$0xff]  }
  0x87   :  { %1408 = vmatprep.subr.bf16.mxu0 %v2786_v14  ;;  %v3312_v14 = vcombine.low %v3303_v32, %v3303_v32  ;;  %v2892_v32 = vld [vmem:[#allocation5 + $0x4a8] ss:$16 sps:$4 sm:$0xff]  }
  0x8a   :  { %2554 = vmatmul.mubr.msk.bf16.vlgmr.msra.gmra.mxu1 %vm1318_vm0, %v3298_v17  ;;  %1409 = vmatpush1.bf16.msra.mxu0 %v2784_v16  ;;  %v2871_v16 = vld [vmem:[#allocation5 + $0x2e8] ss:$16 sps:$4 sm:$0xff]  }
  0x8b   :  { %1487 = vmatpush1.bf16.msra.mxu1 %v2781_v15  ;;  %1410 = vmatprep.subr.bf16.mxu0 %v2793_v19  ;;  %v2868_v15 = vld [vmem:[#allocation5 + $0x128] ss:$16 sps:$4 sm:$0xff]   ;;  %v2879_v19 = vld [vmem:[#allocation5 + $0x2cc] ss:$16 sps:$4 sm:$0xff]  }
  0x8c   :  { %1488 = vmatprep.subr.bf16.mxu1 %v2790_v18  ;;  %1518 = vmatprep.mubr.bf16.mxu1 %v3285_v47  ;;  %v2827_v47 = vld [vmem:[#allocation5 + $0x5c0] ss:$16 sps:$4 sm:$0xff]   ;;  %v2876_v18 = vld [vmem:[#allocation5 + $0x10c] ss:$16 sps:$4 sm:$0xff]  }
  0x8e   :  { %1411 = vmatpush1.bf16.msra.mxu0 %v2791_v21  ;;  %v2877_v21 = vld [vmem:[#allocation5 + $0x2c8] ss:$16 sps:$4 sm:$0xff]  }
  0x8f   :  { %1489 = vmatpush1.bf16.msra.mxu1 %v2788_v20  ;;  %1412 = vmatprep.subr.bf16.mxu0 %v2799_v23  ;;  %v2874_v20 = vld [vmem:[#allocation5 + $0x108] ss:$16 sps:$4 sm:$0xff]   ;;  %v2885_v23 = vld [vmem:[#allocation5 + $0x2ac] ss:$16 sps:$4 sm:$0xff]  }
  0x90   :  { %1490 = vmatprep.subr.bf16.mxu1 %v2796_v22  ;;  %v2882_v22 = vld [vmem:[#allocation5 + $0x4ec] ss:$16 sps:$4 sm:$0xff]  }
  0x92   :  { %1413 = vmatpush1.bf16.msra.mxu0 %v2797_v25  ;;  %v2883_v25 = vld [vmem:[#allocation5 + $0x2a8] ss:$16 sps:$4 sm:$0xff]  }
  0x93   :  { %1491 = vmatpush1.bf16.msra.mxu1 %v2794_v24  ;;  %1414 = vmatprep.subr.bf16.mxu0 %v2805_v27  ;;  %v2880_v24 = vld [vmem:[#allocation5 + $0x4e8] ss:$16 sps:$4 sm:$0xff]   ;;  %v2891_v27 = vld [vmem:[#allocation5 + $0x28c] ss:$16 sps:$4 sm:$0xff]  }
  0x94   :  { %1492 = vmatprep.subr.bf16.mxu1 %v2802_v26  ;;  %v2888_v26 = vld [vmem:[#allocation5 + $0x4cc] ss:$16 sps:$4 sm:$0xff]  }
  0x96   :  { %1415 = vmatpush1.bf16.msra.mxu0 %v2803_v29  ;;  %v2889_v29 = vld [vmem:[#allocation5 + $0x288] ss:$16 sps:$4 sm:$0xff]  }
  0x97   :  { %1493 = vmatpush1.bf16.msra.mxu1 %v2800_v28  ;;  %1416 = vmatprep.subr.bf16.mxu0 %v2811_v31  ;;  %v2886_v28 = vld [vmem:[#allocation5 + $0x4c8] ss:$16 sps:$4 sm:$0xff]   ;;  %v2897_v31 = vld [vmem:[#allocation5 + $0x26c] ss:$16 sps:$4 sm:$0xff]  }
  0x98   :  { %1494 = vmatprep.subr.bf16.mxu1 %v2808_v30  ;;  %v2894_v30 = vld [vmem:[#allocation5 + $0x4ac] ss:$16 sps:$4 sm:$0xff]  }
  0x9a   :  { %1417 = vmatpush1.bf16.msra.mxu0 %v2809_v35  ;;  %v2903_v35 = vld [vmem:[#allocation5 + $0x24c] ss:$16 sps:$4 sm:$0xff]  }
  0x9b   :  { %1495 = vmatpush1.bf16.msra.mxu1 %v2806_v34  ;;  %1418 = vmatprep.subr.bf16.mxu0 %v2817_v37  ;;  %v2900_v34 = vld [vmem:[#allocation5 + $0x48c] ss:$16 sps:$4 sm:$0xff]  }
  0x9c   :  { %1496 = vmatprep.subr.bf16.mxu1 %v2814_v36  ;;  %v2898_v36 = vld [vmem:[#allocation5 + $0x488] ss:$16 sps:$4 sm:$0xff]   ;;  %v2906_v37 = vld [vmem:[#allocation5 + $0x46c] ss:$16 sps:$4 sm:$0xff]  }
  0x9e   :  { %1419 = vmatpush1.bf16.msra.mxu0 %v2815_v39  ;;  %v2904_v39 = vld [vmem:[#allocation5 + $0x468] ss:$16 sps:$4 sm:$0xff]  }
  0x9f   :  { %1497 = vmatpush1.bf16.msra.mxu1 %v2812_v38  ;;  %1420 = vmatprep.subr.bf16.mxu0 %v2823_v41  ;;  %v2909_v38 = vld [vmem:[#allocation5 + $0x22c] ss:$16 sps:$4 sm:$0xff]  }
  0xa0   :  { %1498 = vmatprep.subr.bf16.mxu1 %v2820_v40  ;;  %v2912_v40 = vld [vmem:[#allocation5 + $0x44c] ss:$16 sps:$4 sm:$0xff]  }
  0xa1   :  { %v2915_v41 = vld [vmem:[#allocation5 + $0x20c] ss:$16 sps:$4 sm:$0xff]  }
  0xa2   :  { %1421 = vmatpush2.bf16.msra.mxu0 %v2821_v43  ;;  %v2913_v43 = vld [vmem:[#allocation5 + $0x208] ss:$16 sps:$4 sm:$0xff]  }
  0xa3   :  { %1499 = vmatpush1.bf16.msra.mxu1 %v2818_v42  ;;  %1422 = vmatprep.subr.bf16.mxu0 %v2829_v45  ;;  %v2910_v42 = vld [vmem:[#allocation5 + $0x448] ss:$16 sps:$4 sm:$0xff]   ;;  %v2921_v45 = vld [vmem:[#allocation5 + $0x3ec] ss:$16 sps:$4 sm:$0xff]  }
  0xa4   :  { %1500 = vmatprep.subr.bf16.mxu1 %v2826_v44  ;;  %v2918_v44 = vld [vmem:[#allocation5 + $0x42c] ss:$16 sps:$4 sm:$0xff]  }
  0xa6   :  { %1423 = vmatpush2.bf16.msra.mxu0 %v2827_v47  ;;  %v2919_v47 = vld [vmem:[#allocation5 + $0x3e8] ss:$16 sps:$4 sm:$0xff]  }
  0xa7   :  { %1501 = vmatpush1.bf16.msra.mxu1 %v2824_v46  ;;  %1424 = vmatprep.subr.bf16.mxu0 %v2835_v49  ;;  %v2916_v46 = vld [vmem:[#allocation5 + $0x428] ss:$16 sps:$4 sm:$0xff]   ;;  %v2927_v49 = vld [vmem:[#allocation5 + $0x3cc] ss:$16 sps:$4 sm:$0xff]  }
  0xa8   :  { %1502 = vmatprep.subr.bf16.mxu1 %v2832_v48  ;;  %v2924_v48 = vld [vmem:[#allocation5 + $0x40c] ss:$16 sps:$4 sm:$0xff]  }
  0xaa   :  { %1425 = vmatpush2.bf16.msra.mxu0 %v2833_v52  ;;  %v2925_v52 = vld [vmem:[#allocation5 + $0x3c8] ss:$16 sps:$4 sm:$0xff]  }
  0xab   :  { %1503 = vmatpush2.bf16.msra.mxu1 %v2830_v50  ;;  %1426 = vmatprep.subr.bf16.mxu0 %v2841_v54  ;;  %v2922_v50 = vld [vmem:[#allocation5 + $0x408] ss:$16 sps:$4 sm:$0xff]   ;;  %v2933_v54 = vld [vmem:[#allocation5 + $0x3ac] ss:$16 sps:$4 sm:$0xff]  }
  0xac   :  { %1504 = vmatprep.subr.bf16.mxu1 %v2838_v53  ;;  %v2930_v53 = vld [vmem:[#allocation5 + $0x5ec] ss:$16 sps:$4 sm:$0xff]  }
  0xae   :  { %1427 = vmatpush2.bf16.msra.mxu0 %v2839_v56  ;;  %v2931_v56 = vld [vmem:[#allocation5 + $0x3a8] ss:$16 sps:$4 sm:$0xff]  }
  0xaf   :  { %1505 = vmatpush2.bf16.msra.mxu1 %v2836_v55  ;;  %1428 = vmatprep.subr.bf16.mxu0 %v2847_v58  ;;  %v2928_v55 = vld [vmem:[#allocation5 + $0x5e8] ss:$16 sps:$4 sm:$0xff]   ;;  %v2939_v58 = vld [vmem:[#allocation5 + $0x38c] ss:$16 sps:$4 sm:$0xff]  }
  0xb0   :  { %1506 = vmatprep.subr.bf16.mxu1 %v2844_v57  ;;  %v2936_v57 = vld [vmem:[#allocation5 + $0x5cc] ss:$16 sps:$4 sm:$0xff]  }
  0xb2   :  { %1429 = vmatpush2.bf16.msra.mxu0 %v2845_v60  ;;  %v2937_v60 = vld [vmem:[#allocation5 + $0x388] ss:$16 sps:$4 sm:$0xff]  }
  0xb3   :  { %1507 = vmatpush2.bf16.msra.mxu1 %v2842_v59  ;;  %1430 = vmatprep.subr.bf16.mxu0 %v2853_v62  ;;  %v2934_v59 = vld [vmem:[#allocation5 + $0x5c8] ss:$16 sps:$4 sm:$0xff]   ;;  %v2945_v62 = vld [vmem:[#allocation5 + $0x36c] ss:$16 sps:$4 sm:$0xff]  }
  0xb4   :  { %1508 = vmatprep.subr.bf16.mxu1 %v2850_v61  ;;  %v2942_v61 = vld [vmem:[#allocation5 + $0x5ac] ss:$16 sps:$4 sm:$0xff]  }
  0xb6   :  { %1431 = vmatpush2.bf16.msra.mxu0 %v2851_v0  ;;  %v2943_v0 = vld [vmem:[#allocation5 + $0x368] ss:$16 sps:$4 sm:$0xff]  }
  0xb7   :  { %1509 = vmatpush2.bf16.msra.mxu1 %v2848_v63  ;;  %1432 = vmatprep.subr.bf16.mxu0 %v2859_v2  ;;  %v2940_v63 = vld [vmem:[#allocation5 + $0x5a8] ss:$16 sps:$4 sm:$0xff]   ;;  %v2951_v2 = vld [vmem:[#allocation5 + $0x34c] ss:$16 sps:$4 sm:$0xff]  }
  0xb8   :  { %1510 = vmatprep.subr.bf16.mxu1 %v2856_v1  ;;  %v2948_v1 = vld [vmem:[#allocation5 + $0x58c] ss:$16 sps:$4 sm:$0xff]  }
  0xba   :  { %1433 = vmatpush2.bf16.msra.mxu0 %v2857_v4  ;;  %v2949_v4 = vld [vmem:[#allocation5 + $0x348] ss:$16 sps:$4 sm:$0xff]  }
  0xbb   :  { %1511 = vmatpush2.bf16.msra.mxu1 %v2854_v3  ;;  %1434 = vmatprep.subr.bf16.mxu0 %v2865_v8  ;;  %v2946_v3 = vld [vmem:[#allocation5 + $0x588] ss:$16 sps:$4 sm:$0xff]   ;;  %v2957_v8 = vld [vmem:[#allocation5 + $0x32c] ss:$16 sps:$4 sm:$0xff]  }
  0xbc   :  { %1512 = vmatprep.subr.bf16.mxu1 %v2862_v5  ;;  %v2954_v5 = vld [vmem:[#allocation5 + $0x56c] ss:$16 sps:$4 sm:$0xff]  }
  0xbe   :  { %1435 = vmatpush2.bf16.msra.mxu0 %v2863_v10  ;;  %v2955_v10 = vld [vmem:[#allocation5 + $0x328] ss:$16 sps:$4 sm:$0xff]  }
  0xbf   :  { %1513 = vmatpush2.bf16.msra.mxu1 %v2860_v9  ;;  %1527 = vmatprep.subr.bf16.mxu0 %v2873_v12  ;;  %v2952_v9 = vld [vmem:[#allocation5 + $0x568] ss:$16 sps:$4 sm:$0xff]   ;;  %v2963_v12 = vld [vmem:[#allocation5 + $0x30c] ss:$16 sps:$4 sm:$0xff]  }
  0xc0   :  { %1514 = vmatprep.subr.bf16.mxu1 %v2870_v11  ;;  %v2960_v11 = vld [vmem:[#allocation5 + $0x54c] ss:$16 sps:$4 sm:$0xff]  }
  0xc1   :  { %1437 = vmatmul.mubr.bf16.vlgmr.msra.gmra.mxu0 %v3312_v14 }
  0xc2   :  { %1528 = vmatpush1.bf16.msra.mxu0 %v2871_v16  ;;  %1559 = vmatprep.mubr.bf16.mxu0 %v3287_v51  ;;  %v2895_v51 = vld [vmem:[#allocation5 + $0x268] ss:$16 sps:$4 sm:$0xff]  }
  0xc3   :  { %1515 = vmatpush2.bf16.msra.mxu1 %v2868_v15  ;;  %1529 = vmatprep.subr.bf16.mxu0 %v2879_v19  ;;  %v2958_v15 = vld [vmem:[#allocation5 + $0x548] ss:$16 sps:$4 sm:$0xff]  }
  0xc4   :  { %1516 = vmatprep.subr.bf16.mxu1 %v2876_v18  ;;  %v2961_v16 = vld [vmem:[#allocation5 + $0x308] ss:$16 sps:$4 sm:$0xff]   ;;  %v2966_v18 = vld [vmem:[#allocation5 + $0x52c] ss:$16 sps:$4 sm:$0xff]  }
  0xc5   :  { %v2975_v19 = vld [vmem:[#allocation8 + $0x74] ss:$8 sps:$4 sm:$0xff]  }
  0xc6   :  { %1530 = vmatpush1.bf16.msra.mxu0 %v2877_v21  ;;  %v2973_v21 = vld [vmem:[#allocation8 + $0x70] ss:$8 sps:$4 sm:$0xff]  }
  0xc7   :  { %1517 = vmatpush2.bf16.msra.mxu1 %v2874_v20  ;;  %1531 = vmatprep.subr.bf16.mxu0 %v2885_v23  ;;  %v2964_v20 = vld [vmem:[#allocation5 + $0x528] ss:$16 sps:$4 sm:$0xff]  }
  0xc8   :  { %1568 = vmatprep.subr.bf16.mxu1 %v2882_v22  ;;  %v2969_v22 = vld [vmem:[#allocation5 + $0x50c] ss:$16 sps:$4 sm:$0xff]   ;;  %v2978_v23 = vld [vmem:[#allocation8 + $0x64] ss:$8 sps:$4 sm:$0xff]  }
  0xca   :  { %1519 = vmatmul.mubr.bf16.vlgmr.msra.gmra.mxu1 %v3291_v6  ;;  %1532 = vmatpush1.bf16.msra.mxu0 %v2883_v25  ;;  %v2901_v6 = vld [vmem:[#allocation5 + $0x248] ss:$16 sps:$4 sm:$0xff]   ;;  %v2976_v25 = vld [vmem:[#allocation8 + $0x60] ss:$8 sps:$4 sm:$0xff]  }
  0xcb   :  { %1569 = vmatpush1.bf16.msra.mxu1 %v2880_v24  ;;  %1533 = vmatprep.subr.bf16.mxu0 %v2891_v27  ;;  %v2967_v24 = vld [vmem:[#allocation5 + $0x508] ss:$16 sps:$4 sm:$0xff]  }
  0xcc   :  { %1570 = vmatprep.subr.bf16.mxu1 %v2888_v26  ;;  %1600 = vmatprep.mubr.bf16.mxu1 %v3307_v33  ;;  %v2907_v33 = vld [vmem:[#allocation5 + $0x228] ss:$16 sps:$4 sm:$0xff]   ;;  %v2972_v26 = vld [vmem:[#allocation5 + $0x60c] ss:$16 sps:$4 sm:$0xff]  }
  0xcd   :  { %v2981_v27 = vld [vmem:[#allocation8 + $0x54] ss:$8 sps:$4 sm:$0xff]  }
  0xce   :  { %1534 = vmatpush1.bf16.msra.mxu0 %v2889_v29  ;;  %v2979_v29 = vld [vmem:[#allocation8 + $0x50] ss:$8 sps:$4 sm:$0xff]  }
  0xcf   :  { %1571 = vmatpush1.bf16.msra.mxu1 %v2886_v28  ;;  %1535 = vmatprep.subr.bf16.mxu0 %v2897_v31  ;;  %v2970_v28 = vld [vmem:[#allocation5 + $0x608] ss:$16 sps:$4 sm:$0xff]  }
  0xd0   :  { %1572 = vmatprep.subr.bf16.mxu1 %v2894_v30  ;;  %v2984_v30 = vld [vmem:[#allocation8 + $0x44] ss:$8 sps:$4 sm:$0xff]   ;;  %v2987_v31 = vld [vmem:[#allocation8 + $0x34] ss:$8 sps:$4 sm:$0xff]  }
  0xd2   :  { %1536 = vmatpush1.bf16.msra.mxu0 %v2895_v51  ;;  %v3021_v51 = vld [vmem:[#allocation8 + $0x170] ss:$8 sps:$4 sm:$0xff]  }
  0xd3   :  { %1573 = vmatpush1.bf16.msra.mxu1 %v2892_v32  ;;  %1537 = vmatprep.subr.bf16.mxu0 %v2903_v35  ;;  %v2985_v32 = vld [vmem:[#allocation8 + $0x30] ss:$8 sps:$4 sm:$0xff]   ;;  %v2990_v35 = vld [vmem:[#allocation8 + $0x24] ss:$8 sps:$4 sm:$0xff]  }
  0xd4   :  { %1574 = vmatprep.subr.bf16.mxu1 %v2900_v34  ;;  %v3023_v34 = vld [vmem:[#allocation8 + $0x174] ss:$8 sps:$4 sm:$0xff]  }
  0xd6   :  { %1538 = vmatpush1.bf16.msra.mxu0 %v2901_v6  ;;  %v2988_v6 = vld [vmem:[#allocation8 + $0x20] ss:$8 sps:$4 sm:$0xff]  }
  0xd7   :  { %1575 = vmatpush1.bf16.msra.mxu1 %v2898_v36  ;;  %1539 = vmatprep.subr.bf16.mxu0 %v2909_v38  ;;  %v3026_v36 = vld [vmem:[#allocation8 + $0x164] ss:$8 sps:$4 sm:$0xff]   ;;  %v3027_v38 = vld [vmem:[#allocation8 + $0x150] ss:$8 sps:$4 sm:$0xff]  }
  0xd8   :  { %1576 = vmatprep.subr.bf16.mxu1 %v2906_v37  ;;  %v2993_v37 = vld [vmem:[#allocation8 + $0x14] ss:$8 sps:$4 sm:$0xff]  }
  0xda   :  { %1540 = vmatpush1.bf16.msra.mxu0 %v2907_v33  ;;  %v3032_v33 = vld [vmem:[#allocation8 + $0x144] ss:$8 sps:$4 sm:$0xff]  }
  0xdb   :  { %1577 = vmatpush1.bf16.msra.mxu1 %v2904_v39  ;;  %1541 = vmatprep.subr.bf16.mxu0 %v2915_v41  ;;  %v2991_v39 = vld [vmem:[#allocation8 + $0x10] ss:$8 sps:$4 sm:$0xff]   ;;  %v3030_v41 = vld [vmem:[#allocation8 + $0x140] ss:$8 sps:$4 sm:$0xff]  }
  0xdc   :  { %1578 = vmatprep.subr.bf16.mxu1 %v2912_v40  ;;  %v2996_v40 = vld [vmem:[#allocation8 + $0x4] ss:$8 sps:$4 sm:$0xff]  }
  0xde   :  { %1542 = vmatpush1.bf16.msra.mxu0 %v2913_v43  ;;  %v2999_v43 = vld [vmem:[#allocation8 + $0xf4] ss:$8 sps:$4 sm:$0xff]  }
  0xdf   :  { %1579 = vmatpush1.bf16.msra.mxu1 %v2910_v42  ;;  %1543 = vmatprep.subr.bf16.mxu0 %v2921_v45  ;;  %v3035_v42 = vld [vmem:[#allocation8 + $0x134] ss:$8 sps:$4 sm:$0xff]   ;;  %v2997_v45 = vld [vmem:[#allocation8 + $0xf0] ss:$8 sps:$4 sm:$0xff]  }
  0xe0   :  { %1580 = vmatprep.subr.bf16.mxu1 %v2918_v44  ;;  %v3033_v44 = vld [vmem:[#allocation8 + $0x130] ss:$8 sps:$4 sm:$0xff]  }
  0xe2   :  { %1544 = vmatpush2.bf16.msra.mxu0 %v2919_v47  ;;  %v3002_v47 = vld [vmem:[#allocation8 + $0xe4] ss:$8 sps:$4 sm:$0xff]  }
  0xe3   :  { %1581 = vmatpush1.bf16.msra.mxu1 %v2916_v46  ;;  %1545 = vmatprep.subr.bf16.mxu0 %v2927_v49  ;;  %v3038_v46 = vld [vmem:[#allocation8 + $0x124] ss:$8 sps:$4 sm:$0xff]   ;;  %v3000_v49 = vld [vmem:[#allocation8 + $0xe0] ss:$8 sps:$4 sm:$0xff]  }
  0xe4   :  { %1582 = vmatprep.subr.bf16.mxu1 %v2924_v48  ;;  %v3036_v48 = vld [vmem:[#allocation8 + $0x120] ss:$8 sps:$4 sm:$0xff]  }
  0xe6   :  { %1546 = vmatpush2.bf16.msra.mxu0 %v2925_v52  ;;  %v3005_v52 = vld [vmem:[#allocation8 + $0xd4] ss:$8 sps:$4 sm:$0xff]  }
  0xe7   :  { %1583 = vmatpush1.bf16.msra.mxu1 %v2922_v50  ;;  %1547 = vmatprep.subr.bf16.mxu0 %v2933_v54  ;;  %v3041_v50 = vld [vmem:[#allocation8 + $0x114] ss:$8 sps:$4 sm:$0xff]   ;;  %v3003_v54 = vld [vmem:[#allocation8 + $0xd0] ss:$8 sps:$4 sm:$0xff]  }
  0xe8   :  { %1584 = vmatprep.subr.bf16.mxu1 %v2930_v53  ;;  %v3039_v53 = vld [vmem:[#allocation8 + $0x110] ss:$8 sps:$4 sm:$0xff]  }
  0xea   :  { %1548 = vmatpush2.bf16.msra.mxu0 %v2931_v56  ;;  %v3008_v56 = vld [vmem:[#allocation8 + $0xc4] ss:$8 sps:$4 sm:$0xff]  }
  0xeb   :  { %1585 = vmatpush2.bf16.msra.mxu1 %v2928_v55  ;;  %1549 = vmatprep.subr.bf16.mxu0 %v2939_v58  ;;  %v3044_v55 = vld [vmem:[#allocation8 + $0x104] ss:$8 sps:$4 sm:$0xff]   ;;  %v3006_v58 = vld [vmem:[#allocation8 + $0xc0] ss:$8 sps:$4 sm:$0xff]  }
  0xec   :  { %1586 = vmatprep.subr.bf16.mxu1 %v2936_v57  ;;  %v3042_v57 = vld [vmem:[#allocation8 + $0x100] ss:$8 sps:$4 sm:$0xff]  }
  0xee   :  { %1550 = vmatpush2.bf16.msra.mxu0 %v2937_v60  ;;  %v3011_v60 = vld [vmem:[#allocation8 + $0xb4] ss:$8 sps:$4 sm:$0xff]  }
  0xef   :  { %1587 = vmatpush2.bf16.msra.mxu1 %v2934_v59  ;;  %1551 = vmatprep.subr.bf16.mxu0 %v2945_v62  ;;  %v3047_v59 = vld [vmem:[#allocation8 + $0x1f4] ss:$8 sps:$4 sm:$0xff]   ;;  %v3009_v62 = vld [vmem:[#allocation8 + $0xb0] ss:$8 sps:$4 sm:$0xff]  }
  0xf0   :  { %1588 = vmatprep.subr.bf16.mxu1 %v2942_v61  ;;  %v3045_v61 = vld [vmem:[#allocation8 + $0x1f0] ss:$8 sps:$4 sm:$0xff]  }
  0xf2   :  { %1552 = vmatpush2.bf16.msra.mxu0 %v2943_v0  ;;  %v3014_v0 = vld [vmem:[#allocation8 + $0xa4] ss:$8 sps:$4 sm:$0xff]  }
  0xf3   :  { %1589 = vmatpush2.bf16.msra.mxu1 %v2940_v63  ;;  %1553 = vmatprep.subr.bf16.mxu0 %v2951_v2  ;;  %v3050_v63 = vld [vmem:[#allocation8 + $0x1e4] ss:$8 sps:$4 sm:$0xff]   ;;  %v3012_v2 = vld [vmem:[#allocation8 + $0xa0] ss:$8 sps:$4 sm:$0xff]  }
  0xf4   :  { %1590 = vmatprep.subr.bf16.mxu1 %v2948_v1  ;;  %v3048_v1 = vld [vmem:[#allocation8 + $0x1e0] ss:$8 sps:$4 sm:$0xff]  }
  0xf6   :  { %1554 = vmatpush2.bf16.msra.mxu0 %v2949_v4  ;;  %v3015_v4 = vld [vmem:[#allocation8 + $0x90] ss:$8 sps:$4 sm:$0xff]  }
  0xf7   :  { %1591 = vmatpush2.bf16.msra.mxu1 %v2946_v3  ;;  %1555 = vmatprep.subr.bf16.mxu0 %v2957_v8  ;;  %v3017_v3 = vld [vmem:[#allocation8 + $0x94] ss:$8 sps:$4 sm:$0xff]   ;;  %v3018_v8 = vld [vmem:[#allocation8 + $0x80] ss:$8 sps:$4 sm:$0xff]  }
  0xf8   :  { %1592 = vmatprep.subr.bf16.mxu1 %v2954_v5  ;;  %v3020_v5 = vld [vmem:[#allocation8 + $0x84] ss:$8 sps:$4 sm:$0xff]  }
  0xfa   :  { %1556 = vmatpush2.bf16.msra.mxu0 %v2955_v10 }
  0xfb   :  { %1593 = vmatpush2.bf16.msra.mxu1 %v2952_v9  ;;  %1557 = vmatprep.subr.bf16.mxu0 %v2963_v12 }
  0xfc   :  { %1594 = vmatprep.subr.bf16.mxu1 %v2960_v11  ;;  %v3053_v11 = vld [vmem:[#allocation8 + $0x1d4] ss:$8 sps:$4 sm:$0xff]  }
  0xfe   :  { %1558 = vmatpush2.bf16.msra.mxu0 %v2961_v16  ;;  %v3051_v16 = vld [vmem:[#allocation8 + $0x1d0] ss:$8 sps:$4 sm:$0xff]  }
  0xff   :  { %1595 = vmatpush2.bf16.msra.mxu1 %v2958_v15  ;;  %2062 = vmatprep.subr.bf16.mxu0 %v2975_v19 }
 0x100   :  { %1596 = vmatprep.subr.bf16.mxu1 %v2966_v18  ;;  %v3056_v18 = vld [vmem:[#allocation8 + $0x1c4] ss:$8 sps:$4 sm:$0xff]  }
 0x101   :  { %1560 = vmatmul.mubr.bf16.vlgmr.msra.gmra.mxu0 %v3293_v7  ;;  %v2982_v7 = vld [vmem:[#allocation8 + $0x40] ss:$8 sps:$4 sm:$0xff]  }
 0x102   :  { %2063 = vmatpush1.bf16.msra.mxu0 %v2973_v21  ;;  %v3054_v21 = vld [vmem:[#allocation8 + $0x1c0] ss:$8 sps:$4 sm:$0xff]  }
 0x103   :  { %1597 = vmatpush2.bf16.msra.mxu1 %v2964_v20  ;;  %2064 = vmatprep.subr.bf16.mxu0 %v2978_v23 }
 0x104   :  { %1598 = vmatprep.subr.bf16.mxu1 %v2969_v22 }
 0x106   :  { %2065 = vmatpush1.bf16.msra.mxu0 %v2976_v25  ;;  %v3059_v25 = vld [vmem:[#allocation8 + $0x1b4] ss:$8 sps:$4 sm:$0xff]  }
 0x107   :  { %1599 = vmatpush2.bf16.msra.mxu1 %v2967_v24  ;;  %2066 = vmatprep.subr.bf16.mxu0 %v2981_v27  ;;  %v3057_v27 = vld [vmem:[#allocation8 + $0x1b0] ss:$8 sps:$4 sm:$0xff]  }
 0x108   :  { %1623 = vmatprep.subr.bf16.mxu1 %v2972_v26 }
 0x10a   :  { %1601 = vmatmul.mubr.bf16.vlgmr.msra.gmra.mxu1 %v3312_v14  ;;  %2067 = vmatpush1.bf16.msra.mxu0 %v2979_v29  ;;  %v3024_v14 = vld [vmem:[#allocation8 + $0x160] ss:$8 sps:$4 sm:$0xff]   ;;  %v3062_v29 = vld [vmem:[#allocation8 + $0x1a4] ss:$8 sps:$4 sm:$0xff]  }
 0x10b   :  { %1624 = vmatpush1.bf16.msra.mxu1 %v2970_v28  ;;  %1641 = vmatprep.mubr.bf16.mxu1 %v3228_v13  ;;  %v3029_v13 = vld [vmem:[#allocation8 + $0x154] ss:$8 sps:$4 sm:$0xff]  }
 0x10c   :  { %2068 = vmatprep.subr.bf16.mxu0 %v2984_v30  ;;  %2103 = vmatprep.subr.bf16.mxu1 %v3023_v34  ;;  %v3066_v34 = vld [vmem:[#allocation8 + $0x180] ss:$8 sps:$4 sm:$0xff]  }
 0x10e   :  { %2069 = vmatpush1.bf16.msra.mxu0 %v2982_v7  ;;  %v3060_v7 = vld [vmem:[#allocation8 + $0x1a0] ss:$8 sps:$4 sm:$0xff]  }
 0x10f   :  { %2070 = vmatprep.subr.bf16.mxu0 %v2987_v31  ;;  %v3065_v31 = vld [vmem:[#allocation8 + $0x194] ss:$8 sps:$4 sm:$0xff]  }
 0x112   :  { %2555 = vmatmul.mubr.msk.bf16.vlgmr.msra.gmra.mxu1 %vm1318_vm0, %v3298_v17  ;;  %2071 = vmatpush1.bf16.msra.mxu0 %v2985_v32  ;;  %v2994_v17 = vld [vmem:[#allocation8] ss:$8 sps:$4 sm:$0xff]   ;;  %v3063_v32 = vld [vmem:[#allocation8 + $0x190] ss:$8 sps:$4 sm:$0xff]  }
 0x113   :  { %2104 = vmatpush1.bf16.msra.mxu1 %v3021_v51  ;;  %2072 = vmatprep.subr.bf16.mxu0 %v2990_v35  ;;  %v3068_v51 = vld [vmem:[#allocation8 + $0x184] ss:$8 sps:$4 sm:$0xff]   ;;  %v294_v35 = vlaneseq }
 0x114   :  { %2105 = vmatprep.subr.bf16.mxu1 %v3026_v36 }
 0x115   :  { %v3323_v36 = vshrl.u32 %v294_v35, 7  ;;  %v3074_v35 = vld [vmem:[#allocation10 + $0x28] sm:$0xff]  }
 0x116   :  { %2073 = vmatpush1.bf16.msra.mxu0 %v2988_v6  ;;  %v292_v6 = vld [vmem:[#allocation7] sm:$0xf] }
 0x117   :  { %2106 = vmatpush1.bf16.msra.mxu1 %v3024_v14  ;;  %2074 = vmatprep.subr.bf16.mxu0 %v2993_v37  ;;  %v296_v14 = vsub.s32 0, %v3323_v36 }
 0x118   :  { %2107 = vmatprep.subr.bf16.mxu1 %v3029_v13  ;;  %v300_v13 = vsub.s32 1, %v3323_v36 }
 0x119   :  { %v297_v37 = vrot.slane %v292_v6, %v296_v14 }
 0x11a   :  { %2075 = vmatpush1.bf16.msra.mxu0 %v2991_v39 }
 0x11b   :  { %2108 = vmatpush1.bf16.msra.mxu1 %v3027_v38  ;;  %2076 = vmatprep.subr.bf16.mxu0 %v2996_v40  ;;  %v301_v38 = vrot.slane %v292_v6, %v300_v13 }
 0x11c   :  { %2109 = vmatprep.subr.bf16.mxu1 %v3032_v33 }
 0x11e   :  { %2077 = vmatpush1.bf16.msra.mxu0 %v2994_v17 }
 0x11f   :  { %2110 = vmatpush1.bf16.msra.mxu1 %v3030_v41  ;;  %2078 = vmatprep.subr.bf16.mxu0 %v2999_v43 }
 0x120   :  { %2111 = vmatprep.subr.bf16.mxu1 %v3035_v42 }
 0x122   :  { %2079 = vmatpush2.bf16.msra.mxu0 %v2997_v45 }
 0x123   :  { %2112 = vmatpush1.bf16.msra.mxu1 %v3033_v44  ;;  %2080 = vmatprep.subr.bf16.mxu0 %v3002_v47 }
 0x124   :  { %2113 = vmatprep.subr.bf16.mxu1 %v3038_v46 }
 0x126   :  { %2081 = vmatpush2.bf16.msra.mxu0 %v3000_v49 }
 0x127   :  { %2114 = vmatpush1.bf16.msra.mxu1 %v3036_v48  ;;  %2082 = vmatprep.subr.bf16.mxu0 %v3005_v52 }
 0x128   :  { %2115 = vmatprep.subr.bf16.mxu1 %v3041_v50 }
 0x12a   :  { %2083 = vmatpush2.bf16.msra.mxu0 %v3003_v54 }
 0x12b   :  { %2116 = vmatpush1.bf16.msra.mxu1 %v3039_v53  ;;  %2084 = vmatprep.subr.bf16.mxu0 %v3008_v56 }
 0x12c   :  { %2117 = vmatprep.subr.bf16.mxu1 %v3044_v55 }
 0x12e   :  { %2085 = vmatpush2.bf16.msra.mxu0 %v3006_v58 }
 0x12f   :  { %2118 = vmatpush1.bf16.msra.mxu1 %v3042_v57  ;;  %2086 = vmatprep.subr.bf16.mxu0 %v3011_v60 }
 0x130   :  { %2119 = vmatprep.subr.bf16.mxu1 %v3047_v59 }
 0x132   :  { %2087 = vmatpush2.bf16.msra.mxu0 %v3009_v62  ;;  %v304_v62 = vsub.s32 2, %v3323_v36 }
 0x133   :  { %2120 = vmatpush2.bf16.msra.mxu1 %v3045_v61  ;;  %2088 = vmatprep.subr.bf16.mxu0 %v3014_v0  ;;  %v308_v0 = vsub.s32 3, %v3323_v36 }
 0x134   :  { %2121 = vmatprep.subr.bf16.mxu1 %v3050_v63 }
 0x136   :  { %2089 = vmatpush2.bf16.msra.mxu0 %v3012_v2  ;;  %v305_v2 = vrot.slane %v292_v6, %v304_v62 }
 0x137   :  { %2122 = vmatpush2.bf16.msra.mxu1 %v3048_v1  ;;  %2090 = vmatprep.subr.bf16.mxu0 %v3017_v3 }
 0x138   :  { %2123 = vmatprep.subr.bf16.mxu1 %v3053_v11 }
 0x13a   :  { %2091 = vmatpush2.bf16.msra.mxu0 %v3015_v4  ;;  %v309_v4 = vrot.slane %v292_v6, %v308_v0  ;;  %v3075_v6 = vld [vmem:[#allocation10 + $0x60] sm:$0xff]  }
 0x13b   :  { %2092 = vmatprep.subr.bf16.mxu0 %v3020_v5  ;;  %2124 = vmatpush2.bf16.msra.mxu1 %v3051_v16 }
 0x13c   :  { %2125 = vmatprep.subr.bf16.mxu1 %v3056_v18 }
 0x13e   :  { %2093 = vmatpush2.bf16.msra.mxu0 %v3018_v8 }
 0x13f   :  { %2126 = vmatpush2.bf16.msra.mxu1 %v3054_v21 }
 0x140   :  { %2127 = vmatprep.subr.bf16.mxu1 %v3059_v25  ;;  %v3070_v25 = vld [vmem:[#allocation10 + $0x38] sm:$0xff]  }
 0x141   :  { %v1356_v9 = vpop.f32.mrf.mxu0 }
 0x142   :  { %v1397_v10 = vpop.f32.mrf.mxu1  ;;  %v1357_v39 = vadd.f32 %v1356_v9, %v297_v37  ;;  %v3076_v37 = vld [vmem:[#allocation10 + $0x20] sm:$0xff]  }
 0x143   :  { %v1358_v12 = vpop.f32.mrf.mxu0  ;;  %2128 = vmatpush2.bf16.msra.mxu1 %v3057_v27 }
 0x144   :  { %v1399_v15 = vpop.f32.mrf.mxu1  ;;  %2129 = vmatprep.subr.bf16.mxu1 %v3062_v29  ;;  %v1359_v33 = vadd.f32 %v1358_v12, %v301_v38  ;;  %v1398_v40 = vadd.f32 %v1397_v10, %v1357_v39  ;;  %v3077_v38 = vld [vmem:[#allocation10 + $0x58] sm:$0xff]  }
 0x145   :  { %v1360_v20 = vpop.f32.mrf.mxu0  ;;  %v3078_v39 = vld [vmem:[#allocation10 + $0x18] sm:$0xff]  }
 0x146   :  { %v1401_v19 = vpop.f32.mrf.mxu1  ;;  %v1400_v17 = vadd.f32 %v1399_v15, %v1359_v33  ;;  %v3079_v33 = vld [vmem:[#allocation10 + $0x50] sm:$0xff]  }
 0x147   :  { %v1361_v23 = vpop.f32.mrf.mxu0  ;;  %2130 = vmatpush2.bf16.msra.mxu1 %v3060_v7  ;;  %v3072_v7 = vld [vmem:[#allocation10 + $0x30] sm:$0xff]  }
 0x148   :  { %v1402_v22 = vpop.f32.mrf.mxu1  ;;  %2131 = vmatprep.subr.bf16.mxu1 %v3065_v31 }
 0x14a   :  { %v1479_v24 = vpop.f32.mrf.mxu1 }
 0x14b   :  { %2132 = vmatpush2.bf16.msra.mxu1 %v3063_v32  ;;  %v3073_v32 = vld [vmem:[#allocation10 + $0x68] sm:$0xff]  }
 0x14c   :  { %v1481_v26 = vpop.f32.mrf.mxu1  ;;  %2133 = vmatprep.subr.bf16.mxu1 %v3068_v51 }
 0x14e   :  { %v1483_v28 = vpop.f32.mrf.mxu1 }
 0x14f   :  { %2134 = vmatpush2.bf16.msra.mxu1 %v3066_v34 }
 0x150   :  { %v1484_v30 = vpop.f32.mrf.mxu1 }
 0x181   :  { %v1438_v41 = vpop.f32.mrf.mxu0 }
 0x182   :  { %v1439_v42 = vadd.f32 %v1438_v41, %v1398_v40  ;;  %v3080_v40 = vld [vmem:[#allocation10 + $0x10] sm:$0xff]   ;;  %v3081_v41 = vld [vmem:[#allocation10 + $0x48] sm:$0xff]  }
 0x183   :  { %v1440_v43 = vpop.f32.mrf.mxu0 }
 0x184   :  { %v1480_v44 = vadd.f32 %v1479_v24, %v1439_v42  ;;  %v1441_v45 = vadd.f32 %v1440_v43, %v1400_v17  ;;  %v3069_v24 = vld [vmem:[#allocation10 + $0x78] sm:$0xff]   ;;  %v3082_v17 = vld [vmem:[#allocation10 + $0x8] sm:$0xff]   ;;  %v3083_v42 = vld [vmem:[#allocation10 + $0x40] sm:$0xff]  }
 0x185   :  { %v1442_v46 = vpop.f32.mrf.mxu0  ;;  %2637 = vmatprep.subr.bf16.mxu0 %v3069_v24  ;;  %v3084_v43 = vld [vmem:[#allocation10] sm:$0xff]  }
 0x186   :  { %vm1650_vm1 = vcmp.gt.f32.partialorder %v1480_v44, 0.0  ;;  %v1654_v47 = vmul.f32 0.2, %v1480_v44  ;;  %v1482_v48 = vadd.f32 %v1481_v26, %v1441_v45  ;;  %v3071_v26 = vld [vmem:[#allocation10 + $0x70] sm:$0xff]  }
 0x187   :  { %v1443_v49 = vpop.f32.mrf.mxu0 }
 0x188   :  { %v1655_v50 = vmul.f32 0.2, %v1482_v48  ;;  %vm1651_vm2 = vcmp.gt.f32.partialorder %v1482_v48, 0.0  ;;  %v1658_v52 = vsel %vm1650_vm1, %v1480_v44, %v1654_v47 }
 0x189   :  { %v1662_v57 = vpack.c.bf16 %v1658_v52, %v1658_v52 }
 0x18a   :  { %v1520_v53 = vpop.f32.mrf.mxu1  ;;  %v1659_v54 = vsel %vm1651_vm2, %v1482_v48, %v1655_v50  ;;  %v1730_v48 = vld [vmem:[%s3350_s4] sm:$0x3] }
 0x18b   :  { %v1663_v56 = vpack.c.bf16 %v1659_v54, %v1659_v54  ;;  %v1521_v8 = vadd.f32 %v1520_v53, %v305_v2  ;;  %v1735_v49 = vrot.slane %v1730_v48, %v296_v14  ;;  %v1739_v50 = vrot.slane %v1730_v48, %v300_v13  ;;  %v2620_v14 = vld [vmem:[%s3352_s6] ss:$0 sm:$0xff] }
 0x18c   :  { %v1522_v55 = vpop.f32.mrf.mxu1 }
 0x18d   :  { %2094 = vmatprep.mubr.bf16.mxu0 %v1663_v56  ;;  %v1523_v10 = vadd.f32 %v1522_v55, %v309_v4 }
 0x18e   :  { %v1524_v58 = vpop.f32.mrf.mxu1  ;;  %2095 = vmatmul.mubr.bf16.vlgmr.msra.gmra.mxu0 %v1662_v57 }
 0x18f   :  { %2638 = vmatpush3.bf16.msra.mxu0 %v3070_v25 }
 0x190   :  { %v1525_v59 = vpop.f32.mrf.mxu1  ;;  %2639 = vmatprep.subr.bf16.mxu0 %v3071_v26 }
 0x193   :  { %2640 = vmatpush3.bf16.msra.mxu0 %v3072_v7 }
 0x194   :  { %2641 = vmatprep.subr.bf16.mxu0 %v3073_v32 }
 0x197   :  { %2642 = vmatpush3.bf16.msra.mxu0 %v3074_v35 }
 0x198   :  { %2643 = vmatprep.subr.bf16.mxu0 %v3075_v6 }
 0x19b   :  { %2644 = vmatpush3.bf16.msra.mxu0 %v3076_v37 }
 0x19c   :  { %2645 = vmatprep.subr.bf16.mxu0 %v3077_v38 }
 0x19f   :  { %2646 = vmatpush3.bf16.msra.mxu0 %v3078_v39 }
 0x1a0   :  { %2647 = vmatprep.subr.bf16.mxu0 %v3079_v33 }
 0x1a3   :  { %2648 = vmatpush3.bf16.msra.mxu0 %v3080_v40 }
 0x1a4   :  { %2649 = vmatprep.subr.bf16.mxu0 %v3081_v41 }
 0x1a7   :  { %2650 = vmatpush3.bf16.msra.mxu0 %v3082_v17 }
 0x1a8   :  { %2651 = vmatprep.subr.bf16.mxu0 %v3083_v42 }
 0x1ab   :  { %2652 = vmatpush3.bf16.msra.mxu0 %v3084_v43 }
 0x1c1   :  { %v1561_v60 = vpop.f32.mrf.mxu0 }
 0x1c2   :  { %v1562_v11 = vadd.f32 %v1561_v60, %v1521_v8 }
 0x1c3   :  { %v1563_v61 = vpop.f32.mrf.mxu0 }
 0x1c4   :  { %v1564_v15 = vadd.f32 %v1563_v61, %v1523_v10 }
 0x1c5   :  { %v1565_v63 = vpop.f32.mrf.mxu0 }
 0x1c7   :  { %v1566_v1 = vpop.f32.mrf.mxu0 }
 0x1ca   :  { %v1602_v3 = vpop.f32.mrf.mxu1 }
 0x1cb   :  { %v1603_v16 = vadd.f32 %v1602_v3, %v1562_v11 }
 0x1cc   :  { %v1604_v5 = vpop.f32.mrf.mxu1 }
 0x1cd   :  { %v1605_v19 = vadd.f32 %v1604_v5, %v1564_v15 }
 0x1ce   :  { %v1606_v9 = vpop.f32.mrf.mxu1 }
 0x1d0   :  { %v1607_v12 = vpop.f32.mrf.mxu1 }
 0x1d2   :  { %v1643_v18 = vpop.f32.mrf.mxu1 }
 0x1d3   :  { %v1644_v20 = vadd.f32 %v1643_v18, %v1603_v16 }
 0x1d4   :  { %v1645_v21 = vpop.f32.mrf.mxu1 }
 0x1d5   :  { %vm1652_vm3 = vcmp.gt.f32.partialorder %v1644_v20, 0.0  ;;  %v1656_v22 = vmul.f32 0.2, %v1644_v20  ;;  %v1646_v23 = vadd.f32 %v1645_v21, %v1605_v19 }
 0x1d6   :  { %v1647_v27 = vpop.f32.mrf.mxu1 }
 0x1d7   :  { %vm1653_vm4 = vcmp.gt.f32.partialorder %v1646_v23, 0.0  ;;  %v1657_v28 = vmul.f32 0.2, %v1646_v23  ;;  %v1660_v29 = vsel %vm1652_vm3, %v1644_v20, %v1656_v22 }
 0x1d8   :  { %v1648_v30 = vpop.f32.mrf.mxu1  ;;  %v1664_v34 = vpack.c.bf16 %v1660_v29, %v1660_v29 }
 0x1d9   :  { %v1661_v31 = vsel %vm1653_vm4, %v1646_v23, %v1657_v28 }
 0x1da   :  { %v1665_v51 = vpack.c.bf16 %v1661_v31, %v1661_v31 }
 0x1dc   :  { %2135 = vmatprep.mubr.bf16.mxu1 %v1665_v51 }
 0x1dd   :  { %2136 = vmatmul.mubr.bf16.vlgmr.msra.gmra.mxu1 %v1664_v34 }
 0x24e   :  { %v2096_v44 = vpop.f32.mrf.mxu0 }
 0x24f   :  { %v2097_v52 = vadd.f32 %v2096_v44, %v1735_v49 }
 0x250   :  { %v2098_v45 = vpop.f32.mrf.mxu0 }
 0x251   :  { %v2099_v54 = vadd.f32 %v2098_v45, %v1739_v50 }
 0x252   :  { %v2100_v46 = vpop.f32.mrf.mxu0 }
 0x254   :  { %v2101_v47 = vpop.f32.mrf.mxu0 }
 0x29d   :  { %v2137_v53 = vpop.f32.mrf.mxu1 }
 0x29e   :  { %v2138_v55 = vadd.f32 %v2137_v53, %v2097_v52 }
 0x29f   :  { %v2139_v56 = vpop.f32.mrf.mxu1 }
 0x2a0   :  { %vm2144_vm5 = vcmp.gt.f32.partialorder %v2138_v55, 0.0  ;;  %v2146_v57 = vmul.f32 0.2, %v2138_v55  ;;  %v2140_v58 = vadd.f32 %v2139_v56, %v2099_v54 }
 0x2a1   :  { %v2141_v59 = vpop.f32.mrf.mxu1 }
 0x2a2   :  { %vm2145_vm6 = vcmp.gt.f32.partialorder %v2140_v58, 0.0  ;;  %v2147_v60 = vmul.f32 0.2, %v2140_v58  ;;  %v2148_v61 = vsel %vm2144_vm5, %v2138_v55, %v2146_v57 }
 0x2a3   :  { %v2142_v62 = vpop.f32.mrf.mxu1  ;;  %v2150_v1 = vpack.c.bf16 %v2148_v61, %v2148_v61 }
 0x2a4   :  { %v2149_v63 = vsel %vm2145_vm6, %v2140_v58, %v2147_v60 }
 0x2a5   :  { %v2151_v0 = vpack.c.bf16 %v2149_v63, %v2149_v63 }
 0x2a7   :  { %2319 = vmatprep.mubr.bf16.mxu0 %v2151_v0 }
 0x2a8   :  { %2320 = vmatmul.mubr.bf16.vlgmr.msra.gmra.mxu0 %v2150_v1 }
 0x368   :  { %v2653_v36 = vpop.f32.mrf.mxu0 }
 0x36a   :  { %v2654_v13 = vpop.f32.mrf.mxu0 }
 0x36b   :  { %v2655_v2 = vadd.f32 %v2654_v13, %v2653_v36 }
 0x36c   :  { %v2656_v3 = vpop.f32.mrf.mxu0 }
 0x36d   :  { %v2322_v4 = vadd.f32 %v2655_v2, %v2620_v14 }
 0x36e   :  { %v2657_v5 = vpop.f32.mrf.mxu0 }
 0x36f   :  { %v2327_v8 = vsub.f32 0.0, %v2322_v4 }
 0x371   :  { %v2328_v9 = vmul.f32 1.442695, %v2327_v8 }
 0x373   :  { %3085 = vpow2.f32 %v2328_v9 }
 0x380   :  { %v3086_v10 = vpop.eup %3085 }
 0x381   :  { %v2330_v11 = vadd.f32 1.0, %v3086_v10 }
 0x383   :  { %3087 = vrcp.f32 %v2330_v11 }
 0x390   :  { %v3088_v12 = vpop.eup %3087 }
 0x391   :  { %2333 = vst [vmem:[#allocation11] sm:$0xff] %v3088_v12 }
 0x392   :  { %3200 = shalt.err (!%p3197_p1)
}
 0x393   :  { %2343 = dma.vmem_to_hbm [thread:$0]  %s2341_s8, 128, %s3353_s7, [#allocation4]  }
 0x394   :  { %3215 = dma.done.wait [#allocation4], 128  }
 0x395   :  { %3216 = vsyncadd [#allocation4], 4294967168 }
 0x396   :  { %2347 = vsyncpa [#allocation3], 1 }
 0x397   :  { %2348 = vsyncpa [#allocation6], 1 }
 0x398   :  { %2349 = vsyncpa [#allocation9], 1 }
 0x399   :  { %2350 = vsyncpa [#allocation4], 1 }

</bundles_post_ra>
